<compile_context>
chip_gen: v7x
topology: tpu7x:2x2x1
jax: 0.10.0
libtpu: 0.0.40
codegen_flags: <defaults>
</compile_context>

<pallas_src>
import functools

import jax
import jax.numpy as jnp
from jax.experimental import pallas as pl
from jax.experimental.pallas import tpu as pltpu


def _round_up(x, m):
    return ((x + m - 1) // m) * m


def bert_self_output_kernel(x_ref, res_ref, w_ref, b_ref, g_ref, beta_ref,
                            o_ref, *, eps):
    # x_ref   : (tm, H)  activation tile (tokens x hidden)
    # res_ref : (tm, H)  residual (input_tensor) tile
    # w_ref   : (H, H)   dense weight, pre-transposed to (in, out), bf16
    # b_ref   : (1, H)   dense bias
    # g_ref   : (1, H)   LayerNorm weight (gamma)
    # beta_ref: (1, H)   LayerNorm bias (beta)
    # o_ref   : (tm, H)
    x = x_ref[...]

    # y = x @ W^T : weight already stored as (in, out), so contract x dim 1
    # with weight dim 0. bf16 operands, f32 accumulation on the MXU.
    y = jax.lax.dot_general(
        x.astype(jnp.bfloat16), w_ref[...],
        dimension_numbers=(((1,), (0,)), ((), ())),
        preferred_element_type=jnp.float32,
    )                                                        # (tm, H) f32
    y = y + b_ref[...].astype(jnp.float32)                   # broadcast (1,H)

    # TODO(synk): nn.Dropout is identity in eval mode; training-mode stochastic
    # dropout (hidden_dropout_prob=0.1) is intentionally omitted.

    y = y + res_ref[...].astype(jnp.float32)                 # residual add

    # LayerNorm over the hidden axis (biased variance, matching BertLayerNorm).
    u = jnp.mean(y, axis=-1, keepdims=True)
    xc = y - u
    s = jnp.mean(xc * xc, axis=-1, keepdims=True)
    inv = jax.lax.rsqrt(s + eps)
    out = (xc * inv * g_ref[...].astype(jnp.float32)
           + beta_ref[...].astype(jnp.float32))

    o_ref[...] = out.astype(o_ref.dtype)


def bert_self_output(hidden_states, input_tensor, weight, bias,
                     ln_weight, ln_bias, eps=1e-12, block_m=512):
    """hidden_states, input_tensor: (B, S, H); weight: (H_out, H_in) PyTorch
    convention; bias, ln_weight, ln_bias: (H,).

    Output dtype matches hidden_states' dtype (pass bf16 activations for a
    bf16 model; epilogue math stays f32 inside the kernel)."""
    orig_shape = hidden_states.shape
    H = orig_shape[-1]
    x = hidden_states.reshape(-1, H)
    r = input_tensor.reshape(-1, H)
    M = x.shape[0]

    # Token-tile size: multiple of 8 sublanes, capped at block_m. No wrapper
    # padding: the partial final block is masked by Pallas and LayerNorm is
    # strictly row-wise, so tail garbage never reaches valid rows.
    tm = min(block_m, _round_up(M, 8))
    tm = max(8, _round_up(tm, 8))
    # If everything fits in a single tile, split into >=2 tiles so both v7x
    # TensorCores get a "parallel" grid step (no-op cost on v5e/v6e).
    if pl.cdiv(M, tm) == 1 and M > 8:
        tm = max(8, _round_up(pl.cdiv(M, 2), 8))
    grid_m = pl.cdiv(M, tm)

    # One-time weight layout change outside the loop: (out,in) -> (in,out),
    # cast to bf16 (MXU operand dtype). In a real model cache this layout.
    w_t = jnp.asarray(weight).T.astype(jnp.bfloat16)

    b2 = bias.reshape(1, H)
    g2 = ln_weight.reshape(1, H)
    beta2 = ln_bias.reshape(1, H)

    # Grid-invariant operands: single-buffered (index_map is constant, so
    # double-buffering only wastes VMEM — matters most under v7x's 64 MiB).
    invariant = dict(pipeline_mode=pl.Buffered(1))

    out = pl.pallas_call(
        functools.partial(bert_self_output_kernel, eps=eps),
        out_shape=jax.ShapeDtypeStruct((M, H), hidden_states.dtype),
        grid_spec=pltpu.PrefetchScalarGridSpec(
            num_scalar_prefetch=0,
            grid=(grid_m,),
            in_specs=[
                pl.BlockSpec((tm, H), lambda m: (m, 0)),              # activation
                pl.BlockSpec((tm, H), lambda m: (m, 0)),              # residual
                pl.BlockSpec((H, H), lambda m: (0, 0), **invariant),  # weight (resident)
                pl.BlockSpec((1, H), lambda m: (0, 0), **invariant),  # dense bias
                pl.BlockSpec((1, H), lambda m: (0, 0), **invariant),  # LN gamma
                pl.BlockSpec((1, H), lambda m: (0, 0), **invariant),  # LN beta
            ],
            out_specs=pl.BlockSpec((tm, H), lambda m: (m, 0)),
        ),
        compiler_params=pltpu.CompilerParams(
            dimension_semantics=("parallel",),
            # tm=512 working set is ~12-15 MB; 32 MiB is safe on v5e/v6e/v7x.
            vmem_limit_bytes=32 * 1024 * 1024,
        ),
    )(x, r, w_t, b2, g2, beta2)

    return out.reshape(orig_shape)


if __name__ == "__main__":
    # Small shapes consistent with BertConfig: hidden_size=768, seq_length=40.
    B, S, H = 2, 40, 768
    key = jax.random.PRNGKey(0)
    k_x, k_r, k_w, k_b, k_g, k_bb = jax.random.split(key, 6)

    hidden_states = jax.random.normal(k_x, (B, S, H), dtype=jnp.float32)
    input_tensor = jax.random.normal(k_r, (B, S, H), dtype=jnp.float32)
    # Dense weight ~ N(0, 0.02) in PyTorch (out, in) layout; non-trivial biases
    # and LayerNorm params to exercise every fused term.
    weight = 0.02 * jax.random.normal(k_w, (H, H), dtype=jnp.float32)
    bias = 0.05 * jax.random.normal(k_b, (H,), dtype=jnp.float32)
    ln_weight = 1.0 + 0.05 * jax.random.normal(k_g, (H,), dtype=jnp.float32)
    ln_bias = 0.05 * jax.random.normal(k_bb, (H,), dtype=jnp.float32)

    out = bert_self_output(hidden_states, input_tensor, weight, bias,
                           ln_weight, ln_bias)
    out = jax.block_until_ready(out)

    # Pure-JAX f32 reference (dropout is identity in eval mode).
    y = hidden_states @ weight.T + bias
    y = y + input_tensor
    u = y.mean(-1, keepdims=True)
    s = ((y - u) ** 2).mean(-1, keepdims=True)
    ref = ln_weight * (y - u) / jnp.sqrt(s + 1e-12) + ln_bias

    assert out.shape == (B, S, H)
    # bf16 matmul operands (f32 accumulation) -> slightly looser tolerance
    # than f32 parity; this is a deliberate speed/accuracy trade-off.
    assert jnp.allclose(out, ref, atol=3e-2, rtol=3e-2), float(
        jnp.max(jnp.abs(out - ref)))

    print("KERNEL_OK")
</pallas_src>

<mosaic_0001>
module attributes {stable_mosaic.version = 11 : i64} {
  func.func @bert_self_output_kernel(%arg0: i32, %arg1: memref<40x768xf32, #tpu.memory_space<vmem>>, %arg2: memref<40x768xf32, #tpu.memory_space<vmem>>, %arg3: memref<768x768xbf16, #tpu.memory_space<vmem>>, %arg4: memref<1x768xf32, #tpu.memory_space<vmem>>, %arg5: memref<1x768xf32, #tpu.memory_space<vmem>>, %arg6: memref<1x768xf32, #tpu.memory_space<vmem>>, %arg7: memref<40x768xf32, #tpu.memory_space<vmem>>) attributes {dimension_semantics = [#tpu.dimension_semantics<parallel>], iteration_bounds = array<i64: 2>, scalar_prefetch = 0 : i64, scratch_operands = 0 : i64, tpu.core_type = #tpu.core_type<tc>, window_params = [{transform_indices = @transform_0, window_bounds = array<i64: 40, 768>}, {transform_indices = @transform_1, window_bounds = array<i64: 40, 768>}, {pipeline_mode = #tpu.pipeline_mode<synchronous>, transform_indices = @transform_2, window_bounds = array<i64: 768, 768>}, {pipeline_mode = #tpu.pipeline_mode<synchronous>, transform_indices = @transform_3, window_bounds = array<i64: 1, 768>}, {pipeline_mode = #tpu.pipeline_mode<synchronous>, transform_indices = @transform_4, window_bounds = array<i64: 1, 768>}, {pipeline_mode = #tpu.pipeline_mode<synchronous>, transform_indices = @transform_5, window_bounds = array<i64: 1, 768>}, {transform_indices = @transform_6, window_bounds = array<i64: 40, 768>}]} {
    %c0 = arith.constant 0 : index
    %c0_0 = arith.constant 0 : index
    %0 = vector.load %arg1[%c0, %c0_0] : memref<40x768xf32, #tpu.memory_space<vmem>>, vector<40x768xf32>
    %1 = arith.truncf %0 : vector<40x768xf32> to vector<40x768xbf16>
    %c0_1 = arith.constant 0 : index
    %c0_2 = arith.constant 0 : index
    %2 = vector.load %arg3[%c0_1, %c0_2] : memref<768x768xbf16, #tpu.memory_space<vmem>>, vector<768x768xbf16>
    %cst = arith.constant dense<0.000000e+00> : vector<40x768xf32>
    %3 = tpu.matmul %1, %2, %cst {dimension_numbers = #tpu.dot_dimension_numbers<[1], [0], [0], [1], [0, 0, 1, 1], [], []>} : vector<40x768xbf16>, vector<768x768xbf16>, vector<40x768xf32> -> vector<40x768xf32>
    %c0_3 = arith.constant 0 : index
    %c0_4 = arith.constant 0 : index
    %4 = vector.load %arg4[%c0_3, %c0_4] : memref<1x768xf32, #tpu.memory_space<vmem>>, vector<1x768xf32>
    %5 = vector.broadcast %4 : vector<1x768xf32> to vector<40x768xf32>
    %6 = arith.addf %3, %5 : vector<40x768xf32>
    %c0_5 = arith.constant 0 : index
    %c0_6 = arith.constant 0 : index
    %7 = vector.load %arg2[%c0_5, %c0_6] : memref<40x768xf32, #tpu.memory_space<vmem>>, vector<40x768xf32>
    %8 = arith.addf %6, %7 : vector<40x768xf32>
    %cst_7 = arith.constant dense<0.000000e+00> : vector<40xf32>
    %9 = vector.multi_reduction <add>, %8, %cst_7 [1] : vector<40x768xf32> to vector<40xf32>
    %10 = vector.shape_cast %9 : vector<40xf32> to vector<40x1xf32>
    %cst_8 = arith.constant 7.680000e+02 : f32
    %11 = vector.broadcast %cst_8 : f32 to vector<40x1xf32>
    %12 = arith.divf %10, %11 : vector<40x1xf32>
    %13 = vector.broadcast %12 : vector<40x1xf32> to vector<40x768xf32>
    %14 = arith.subf %8, %13 : vector<40x768xf32>
    %15 = arith.mulf %14, %14 : vector<40x768xf32>
    %cst_9 = arith.constant dense<0.000000e+00> : vector<40xf32>
    %16 = vector.multi_reduction <add>, %15, %cst_9 [1] : vector<40x768xf32> to vector<40xf32>
    %17 = vector.shape_cast %16 : vector<40xf32> to vector<40x1xf32>
    %cst_10 = arith.constant 7.680000e+02 : f32
    %18 = vector.broadcast %cst_10 : f32 to vector<40x1xf32>
    %19 = arith.divf %17, %18 : vector<40x1xf32>
    %cst_11 = arith.constant 9.99999996E-13 : f32
    %20 = vector.broadcast %cst_11 : f32 to vector<40x1xf32>
    %21 = arith.addf %19, %20 : vector<40x1xf32>
    %22 = math.rsqrt %21 : vector<40x1xf32>
    %23 = vector.broadcast %22 : vector<40x1xf32> to vector<40x768xf32>
    %24 = arith.mulf %14, %23 : vector<40x768xf32>
    %c0_12 = arith.constant 0 : index
    %c0_13 = arith.constant 0 : index
    %25 = vector.load %arg5[%c0_12, %c0_13] : memref<1x768xf32, #tpu.memory_space<vmem>>, vector<1x768xf32>
    %26 = vector.broadcast %25 : vector<1x768xf32> to vector<40x768xf32>
    %27 = arith.mulf %24, %26 : vector<40x768xf32>
    %c0_14 = arith.constant 0 : index
    %c0_15 = arith.constant 0 : index
    %28 = vector.load %arg6[%c0_14, %c0_15] : memref<1x768xf32, #tpu.memory_space<vmem>>, vector<1x768xf32>
    %29 = vector.broadcast %28 : vector<1x768xf32> to vector<40x768xf32>
    %30 = arith.addf %27, %29 : vector<40x768xf32>
    %c0_16 = arith.constant 0 : index
    %c0_17 = arith.constant 0 : index
    %31 = vector.load %arg7[%c0_16, %c0_17] : memref<40x768xf32, #tpu.memory_space<vmem>>, vector<40x768xf32>
    tpu.vector_store %arg7[%c0_16, %c0_17], %30 {strides = array<i32>} : memref<40x768xf32, #tpu.memory_space<vmem>>, vector<40x768xf32>,
    return
  }
  func.func @transform_0(%arg0: i32) -> (i32, i32) {
    %c0_i32 = arith.constant 0 : i32
    %c0_i32_0 = arith.constant 0 : i32
    return %arg0, %c0_i32 : i32, i32
  }
  func.func @transform_1(%arg0: i32) -> (i32, i32) {
    %c0_i32 = arith.constant 0 : i32
    %c0_i32_0 = arith.constant 0 : i32
    return %arg0, %c0_i32 : i32, i32
  }
  func.func @transform_2(%arg0: i32) -> (i32, i32) {
    %c0_i32 = arith.constant 0 : i32
    %c0_i32_0 = arith.constant 0 : i32
    %c0_i32_1 = arith.constant 0 : i32
    return %c0_i32, %c0_i32_0 : i32, i32
  }
  func.func @transform_3(%arg0: i32) -> (i32, i32) {
    %c0_i32 = arith.constant 0 : i32
    %c0_i32_0 = arith.constant 0 : i32
    %c0_i32_1 = arith.constant 0 : i32
    return %c0_i32, %c0_i32_0 : i32, i32
  }
  func.func @transform_4(%arg0: i32) -> (i32, i32) {
    %c0_i32 = arith.constant 0 : i32
    %c0_i32_0 = arith.constant 0 : i32
    %c0_i32_1 = arith.constant 0 : i32
    return %c0_i32, %c0_i32_0 : i32, i32
  }
  func.func @transform_5(%arg0: i32) -> (i32, i32) {
    %c0_i32 = arith.constant 0 : i32
    %c0_i32_0 = arith.constant 0 : i32
    %c0_i32_1 = arith.constant 0 : i32
    return %c0_i32, %c0_i32_0 : i32, i32
  }
  func.func @transform_6(%arg0: i32) -> (i32, i32) {
    %c0_i32 = arith.constant 0 : i32
    %c0_i32_0 = arith.constant 0 : i32
    return %arg0, %c0_i32 : i32, i32
  }
}

</mosaic_0001>

<bundles_post_ra>
// kernel: tpu_custom_call.1
= control target key start
LH: loop header
LB: loop body
LE: loop exit
PB: predicated region body
PF: predicated region fallthrough
CT: control target
= control target key end

     0   :  { %s5544_s0 = inlined_call_operand.hbm [shape: f32[80,768], index: 0, kind: input, shape index: {}]   ;;  %s5545_s1 = inlined_call_operand.hbm [shape: f32[80,768], index: 1, kind: input, shape index: {}]   ;;  %s5546_s2 = inlined_call_operand.hbm [shape: bf16[768,768], index: 2, kind: input, shape index: {}]   ;;  %s5547_s3 = inlined_call_operand.hbm [shape: f32[1,768], index: 3, kind: input, shape index: {}]   ;;  %s5548_s4 = inlined_call_operand.hbm [shape: f32[1,768], index: 4, kind: input, shape index: {}]   ;;  %s5549_s5 = inlined_call_operand.hbm [shape: f32[1,768], index: 5, kind: input, shape index: {}]   ;;  %s5550_s6 = inlined_call_operand.hbm [shape: f32[80,768], index: 6, kind: output, shape index: {}]  }
   0x1   :  { %5555 = sst [smem:[#allocation20_spill]] %s5544_s0 }
   0x2   :  { %5556 = sst [smem:[#allocation21_spill]] %s5546_s2 }
   0x3   :  { %5557 = sst [smem:[#allocation22_spill]] %s5547_s3 }
   0x4   :  { %11 = vsyncpa [#allocation3], 0 }
   0x5   :  { %13 = vsyncpa [#allocation3 + $0x1], 0 }
   0x6   :  { %14 = vsyncpa [#allocation6], 0 }
   0x7   :  { %16 = vsyncpa [#allocation6 + $0x1], 0 }
   0x8   :  { %17 = vsyncpa [#allocation9], 0 }
   0x9   :  { %18 = vsyncpa [#allocation12], 0 }
   0xa   :  { %19 = vsyncpa [#allocation4], 0 }
   0xb   :  { %21 = vsyncpa [#allocation4 + $0x1], 0  ;;  %s4530_s21 = smov 0   ;;  %s4532_s22 = smov 0  }
   0xc   :  { %s4534_s23 = smov 0   ;;  %s4536_s24 = smov 0  }
   0xd LB: > { %s4551_s25 = sadd.s32 4294967295, %s4480_s24   ;;  %s3268_s26 = sadd.s32 4294967294, %s4480_s24   ;;  %s4480_s24 = sphi %s4536_s24, %s5583_s24   ;;  %s4476_s23 = sphi %s4534_s23, %s5582_s23   ;;  %s4472_s22 = sphi %s4532_s22, %s5581_s22   ;;  %s4468_s21 = sphi %s4530_s21, %s5580_s21  }
   0xe   : > { %p47_p0 = scmp.ne.s32.totalorder %s4472_s22, %s4468_s21  ;;  %p5551_p1 = scmp.eq.s32.totalorder %s4551_s25, 0 }
   0xf   : > { %p187_p3 = scmp.eq.s32.totalorder %s3268_s26, 1  ;;  %p3269_p5 = scmp.ge.s32.totalorder %s4480_s24, 1 }
  0x10   : > { %p4560_p4 = por %p5551_p1, %p47_p0  ;;  %p194_p7 = scmp.lt.s32.totalorder %s4480_s24, 3 }
  0x11   : > { %p4565_p6 = por %p187_p3, %p47_p0  ;;  %s4482_s30 = smov [#allocation7]  }
  0x12   : > { %s5558_s27 = scalar_select %p4560_p4, 1, 0 }
  0x13   : > { %s5559_s28 = scalar_select %p4565_p6, 1, 0 }
  0x14   : > { %p4570_p8 = pnand %p3269_p5, %p194_p7  ;;  %s206_s7 = sshll.u32 %s4482_s30, 4  ;;  %s4574_s7 = int_to_ptr.vmem [resolvable:$true] %s206_s7 }
  0x15   : > { %s4483_s9 = smov [#allocation8]   ;;  %s5562_s2 = sld [smem:[#allocation21_spill]] }
  0x16   : > { %s5560_s29 = scalar_select %p4570_p8, 1, 0 }
  0x17   : > { %p3705_p9 = pneg %p4570_p8  ;;  %s220_s10 = sshll.u32 %s4483_s9, 4  ;;  %s4585_s10 = int_to_ptr.vmem [resolvable:$true] %s220_s10 }
  0x19   : > { %p4581_p11 = pnand %p3705_p9, %p5551_p1 }
  0x1b   : > { %s4226_s13 = scalar_lea.hbm %s5562_s2, 36864  ;;  %p4595_p13 = pneg %p4581_p11 }
  0x1c   : > { %p4227_p12 = scmp.ne.s32.totalorder %s5562_s2, %s4226_s13  ;;  %p4233_p5 = scmp.lt.u32.totalorder %s4226_s13, %s5562_s2 }
  0x1e   : > { %p4229_p0 = pnand %p4595_p13, %p4227_p12 }
  0x20   : > { %p4230_p3 = pneg %p4229_p0 }
  0x22   : > { %p4235_p7 = pnand %p4233_p5, %p4230_p3 }
  0x24   : > { %4238 = shalt.err (!%p4235_p7)
}
  0x25   : > { %s4239_s19 = scalar_lea.vmem %s4574_s7, 36864  ;;  %p4247_p2 = scmp.lt.s32.totalorder %s4574_s7, %s4574_s7 }
  0x26   : > { %p4240_p9 = scmp.ne.s32.totalorder %s4574_s7, %s4239_s19  ;;  %p4248_p6 = scmp.lt.s32.totalorder %s4239_s19, %s4239_s19 }
  0x28   : > { %p4242_p10 = pnand %p4240_p9, %p4595_p13  ;;  %p4249_p12 = por %p4248_p6, %p4247_p2 }
  0x2a   : > { %p4243_p1 = pneg %p4242_p10 }
  0x2c   : > { %p4250_p0 = pnand %p4249_p12, %p4243_p1 }
  0x2e   : > { %4253 = shalt.err (!%p4250_p0)
}
  0x2f   : > { %s4484_s20 = smov 384   ;;  %s4485_s26 = smov 24  }
  0x30   : > { %3708 = dma.hbm_to_vmem [thread:$0]  (!%p4581_p11), %s5562_s2, 36864, %s4574_s7, [#allocation6], %s4484_s20, %s4484_s20, %s4485_s26  }
  0x31   : > { %s5564_s3 = sld [smem:[#allocation22_spill]] }
  0x37   : > { %s4254_s13 = scalar_lea.hbm %s5564_s3, 96 }
  0x38   : > { %p4255_p2 = scmp.ne.s32.totalorder %s5564_s3, %s4254_s13  ;;  %p4261_p10 = scmp.lt.u32.totalorder %s4254_s13, %s5564_s3 }
  0x3a   : > { %p4257_p1 = pnand %p4255_p2, %p4595_p13 }
  0x3c   : > { %p4258_p6 = pneg %p4257_p1 }
  0x3e   : > { %p4263_p3 = pnand %p4261_p10, %p4258_p6 }
  0x40   : > { %4266 = shalt.err (!%p4263_p3)
}
  0x41   : > { %s4267_s7 = scalar_lea.vmem %s4585_s10, 96  ;;  %p4275_p12 = scmp.lt.s32.totalorder %s4585_s10, %s4585_s10 }
  0x42   : > { %p4268_p5 = scmp.ne.s32.totalorder %s4585_s10, %s4267_s7  ;;  %p4276_p0 = scmp.lt.s32.totalorder %s4267_s7, %s4267_s7 }
  0x44   : > { %p4270_p7 = pnand %p4268_p5, %p4595_p13  ;;  %p4277_p2 = por %p4276_p0, %p4275_p12 }
  0x46   : > { %p4271_p9 = pneg %p4270_p7 }
  0x48   : > { %p4278_p1 = pnand %p4277_p2, %p4271_p9 }
  0x4a   : > { %4281 = shalt.err (!%p4278_p1)
}
  0x4b   : > { %3711 = dma.hbm_to_vmem [thread:$0]  (!%p4581_p11), %s5564_s3, 96, %s4585_s10, [#allocation9]  }
  0x4c   : > { %s4486_s26 = smov [#allocation10]   ;;  %s4487_s9 = smov [#allocation11]  }
  0x4d   : > { %s231_s30 = sshll.u32 %s4486_s26, 4  ;;  %s242_s11 = sshll.u32 %s4487_s9, 4  ;;  %s232_s30 = int_to_ptr.vmem [resolvable:$true] %s231_s30  ;;  %s243_s11 = int_to_ptr.vmem [resolvable:$true] %s242_s11 }
  0x4e   : > { %s4282_s14 = scalar_lea.hbm %s5548_s4, 96 }
  0x4f   : > { %p4283_p6 = scmp.ne.s32.totalorder %s5548_s4, %s4282_s14  ;;  %p4289_p5 = scmp.lt.u32.totalorder %s4282_s14, %s5548_s4 }
  0x51   : > { %p4285_p10 = pnand %p4283_p6, %p4595_p13 }
  0x53   : > { %p4286_p3 = pneg %p4285_p10 }
  0x55   : > { %p4291_p7 = pnand %p4289_p5, %p4286_p3 }
  0x57   : > { %4294 = shalt.err (!%p4291_p7)
}
  0x58   : > { %s4295_s10 = scalar_lea.vmem %s232_s30, 96  ;;  %p4303_p2 = scmp.lt.s32.totalorder %s232_s30, %s232_s30 }
  0x59   : > { %p4296_p9 = scmp.ne.s32.totalorder %s232_s30, %s4295_s10  ;;  %p4304_p1 = scmp.lt.s32.totalorder %s4295_s10, %s4295_s10 }
  0x5b   : > { %p4298_p12 = pnand %p4296_p9, %p4595_p13  ;;  %p4305_p4 = por %p4304_p1, %p4303_p2 }
  0x5d   : > { %p4299_p0 = pneg %p4298_p12 }
  0x5f   : > { %p4306_p8 = pnand %p4305_p4, %p4299_p0 }
  0x61   : > { %4309 = shalt.err (!%p4306_p8)
}
  0x62   : > { %3714 = dma.hbm_to_vmem [thread:$0]  (!%p4581_p11), %s5548_s4, 96, %s232_s30, [#allocation9]  }
  0x63   : > { %s4310_s12 = scalar_lea.hbm %s5549_s5, 96 }
  0x64   : > { %p4311_p6 = scmp.ne.s32.totalorder %s5549_s5, %s4310_s12  ;;  %p4317_p8 = scmp.lt.u32.totalorder %s4310_s12, %s5549_s5 }
  0x66   : > { %p4313_p10 = pnand %p4311_p6, %p4595_p13 }
  0x68   : > { %p4314_p4 = pneg %p4313_p10 }
  0x6a   : > { %p4319_p3 = pnand %p4317_p8, %p4314_p4 }
  0x6c   : > { %4322 = shalt.err (!%p4319_p3)
}
  0x6d   : > { %s4323_s18 = scalar_lea.vmem %s243_s11, 96  ;;  %p4331_p12 = scmp.lt.s32.totalorder %s243_s11, %s243_s11 }
  0x6e   : > { %p4324_p5 = scmp.ne.s32.totalorder %s243_s11, %s4323_s18  ;;  %p4332_p0 = scmp.lt.s32.totalorder %s4323_s18, %s4323_s18 }
  0x70   : > { %p4326_p7 = pnand %p4324_p5, %p4595_p13  ;;  %p4333_p2 = por %p4332_p0, %p4331_p12 }
  0x72   : > { %p4327_p9 = pneg %p4326_p7 }
  0x74   : > { %p4334_p1 = pnand %p4333_p2, %p4327_p9 }
  0x76   : > { %4337 = shalt.err (!%p4334_p1)
}
  0x77   : > { %3717 = dma.hbm_to_vmem [thread:$0]  (!%p4581_p11), %s5549_s5, 96, %s243_s11, [#allocation12]  }
  0x78   : > { %s4676_s16 = sadd.s32 1, %s4480_s24   ;;  %s34_s10 = sadd.s32 1, %s4476_s23 }
  0x79   : > { %s31_s8 = ssub.s32 %s4480_s24, %s4676_s16  ;;  %p41_p6 = scmp.ne.s32.totalorder %s4476_s23, %s4472_s22 }
  0x7a   : > { %p32_p13 = scmp.eq.s32.totalorder %s31_s8, 0  ;;  %p42_p10 = scmp.eq.s32.totalorder %s4480_s24, 0 }
  0x7b   : > { %p3733_p4 = scmp.lt.s32.totalorder %s4480_s24, 2  ;;  %p5565_p3 = scmp.eq.s32.totalorder %s4551_s25, 1 }
  0x7c   : > { %s4686_s19 = scalar_select %p32_p13, %s4476_s23, %s34_s10  }
  0x7d   : > { %p43_p8 = por %p42_p10, %p41_p6  ;;  %p4690_p5 = por %p5565_p3, %p41_p6 }
  0x7e   : > { %s253_s26 = sand.u32 1, %s4476_s23   ;;  %s5554_s9 = smul.u32 3840, %s4480_s24 }
  0x7f   : > { %s4696_s11 = smul.u32 240, %s253_s26  ;;  %s5567_s0 = sld [smem:[#allocation20_spill]] }
  0x80   : > { %p4705_p11 = pnand %p3733_p4, %p43_p8  ;;  %s4712_s30 = scalar_lea.sflag [#allocation3], %s253_s26 }
  0x81   : > { %s257_s17 = scalar_lea.vmem [#allocation2], %s4696_s11 }
  0x82   : > { %s265_s18 = sshll.u32 %s257_s17, 4  ;;  %p4340_p9 = pneg %p4705_p11  ;;  %s4710_s18 = int_to_ptr.vmem [resolvable:$true] %s265_s18 }
  0x85   : > { %s4703_s14 = scalar_lea.hbm %s5567_s0, %s5554_s9  ;;  %s4343_s12 = scalar_lea.hbm %s5567_s0, 7680 }
  0x86   : > { %s4338_s7 = scalar_lea.hbm %s4703_s14, 3840  ;;  %p4344_p2 = scmp.lt.u32.totalorder %s4703_s14, %s5567_s0 }
  0x87   : > { %p4339_p7 = scmp.ne.s32.totalorder %s4703_s14, %s4338_s7  ;;  %p4345_p1 = scmp.lt.u32.totalorder %s4343_s12, %s4338_s7 }
  0x88   : > { %p4347_p6 = scmp.lt.u32.totalorder %s4338_s7, %s4703_s14 }
  0x89   : > { %p4341_p12 = pnand %p4340_p9, %p4339_p7  ;;  %p4346_p13 = por %p4345_p1, %p4344_p2 }
  0x8b   : > { %p4342_p0 = pneg %p4341_p12  ;;  %p4348_p10 = por %p4347_p6, %p4346_p13 }
  0x8d   : > { %p4349_p4 = pnand %p4348_p10, %p4342_p0 }
  0x8f   : > { %4352 = shalt.err (!%p4349_p4)
}
  0x90   : > { %s4353_s26 = scalar_lea.vmem %s4710_s18, 3840  ;;  %s4488_s17 = smov [#allocation2]  }
  0x91   : > { %p4354_p8 = scmp.ne.s32.totalorder %s4710_s18, %s4353_s26  ;;  %s4358_s8 = sshll.u32 %s4488_s17, 4  ;;  %s4359_s8 = int_to_ptr.vmem [resolvable:$false] %s4358_s8 }
  0x92   : > { %s4360_s9 = scalar_lea.vmem %s4359_s8, 7680  ;;  %p4361_p12 = scmp.lt.s32.totalorder %s4710_s18, %s4359_s8 }
  0x93   : > { %p4356_p3 = pnand %p4354_p8, %p4340_p9  ;;  %p4362_p2 = scmp.lt.s32.totalorder %s4360_s9, %s4353_s26 }
  0x95   : > { %p4357_p7 = pneg %p4356_p3  ;;  %p4363_p1 = por %p4362_p2, %p4361_p12 }
  0x97   : > { %p4364_p13 = pnand %p4363_p1, %p4357_p7 }
  0x99   : > { %4367 = shalt.err (!%p4364_p13)
}
  0x9a   : > { %s4489_s7 = smov 768   ;;  %s4490_s10 = smov 48  }
  0x9b   : > { %3721 = dma.hbm_to_vmem [thread:$0]  (!%p4705_p11), %s4703_s14, 3840, %s4710_s18, %s4712_s30, %s4489_s7, %s4489_s7, %s4490_s10  }
  0x9c   : > { %s275_s12 = sand.u32 1, %s4480_s24   ;;  %s5569_s13 = smul.u32 3840, %s4480_s24 }
  0x9d   : > { %s279_s9 = scalar_lea.vmem [#allocation5], %s4696_s11  ;;  %s4754_s2 = scalar_lea.sflag [#allocation6], %s275_s12 }
  0x9e   : > { %s4749_s8 = scalar_lea.hbm %s5545_s1, %s5569_s13  ;;  %s287_s0 = sshll.u32 %s279_s9, 4  ;;  %s4752_s0 = int_to_ptr.vmem [resolvable:$true] %s287_s0 }
  0x9f   : > { %s4368_s3 = scalar_lea.hbm %s4749_s8, 3840  ;;  %s4373_s30 = scalar_lea.hbm %s5545_s1, 7680 }
  0xa0   : > { %p4369_p0 = scmp.ne.s32.totalorder %s4749_s8, %s4368_s3  ;;  %p4374_p4 = scmp.lt.u32.totalorder %s4749_s8, %s5545_s1 }
  0xa1   : > { %p4375_p8 = scmp.lt.u32.totalorder %s4373_s30, %s4368_s3  ;;  %p4377_p7 = scmp.lt.u32.totalorder %s4368_s3, %s4749_s8 }
  0xa2   : > { %p4371_p6 = pnand %p4369_p0, %p4340_p9 }
  0xa3   : > { %p4376_p3 = por %p4375_p8, %p4374_p4 }
  0xa4   : > { %p4372_p10 = pneg %p4371_p6 }
  0xa5   : > { %p4378_p12 = por %p4377_p7, %p4376_p3 }
  0xa7   : > { %p4379_p2 = pnand %p4378_p12, %p4372_p10 }
  0xa9   : > { %4382 = shalt.err (!%p4379_p2)
}
  0xaa   : > { %s4383_s11 = scalar_lea.vmem %s4752_s0, 3840  ;;  %s4491_s12 = smov [#allocation5]  }
  0xab   : > { %p4384_p1 = scmp.ne.s32.totalorder %s4752_s0, %s4383_s11  ;;  %s4388_s17 = sshll.u32 %s4491_s12, 4  ;;  %s4389_s17 = int_to_ptr.vmem [resolvable:$false] %s4388_s17 }
  0xac   : > { %s4390_s9 = scalar_lea.vmem %s4389_s17, 7680  ;;  %p4391_p6 = scmp.lt.s32.totalorder %s4752_s0, %s4389_s17 }
  0xad   : > { %p4386_p13 = pnand %p4384_p1, %p4340_p9  ;;  %p4392_p4 = scmp.lt.s32.totalorder %s4390_s9, %s4383_s11 }
  0xaf   : > { %p4387_p0 = pneg %p4386_p13  ;;  %p4393_p8 = por %p4392_p4, %p4391_p6 }
  0xb1   : > { %p4394_p3 = pnand %p4393_p8, %p4387_p0 }
  0xb3   : > { %4397 = shalt.err (!%p4394_p3)
}
  0xb4   : > { %3724 = dma.hbm_to_vmem [thread:$0]  (!%p4705_p11), %s4749_s8, 3840, %s4752_s0, %s4754_s2, %s4489_s7, %s4489_s7, %s4490_s10  }
  0xb5   : > { %p5570_p9 = scmp.ne.s32.totalorder %s5560_s29, 0 }
  0xb6   : > { %s4786_s3 = sand.u32 (!%p5570_p9), 1, %s4472_s22   ;;  %p5571_p10 = scmp.ne.s32.totalorder (!%p5570_p9), %s5558_s27, 0 }
  0xb7   : > { %299 = sbr.rel (%p5570_p9) target bundleno = 1105 (0x451), region = 44  ;;  %s302_s15 = scalar_lea.sflag (!%p5570_p9), [#allocation3], %s4786_s3 }
  0xb8   : > { %s4789_s14 = smul.u32 (!%p5570_p9), 240, %s4786_s3 }
  0xba   : > { %s4793_s18 = scalar_lea.vmem (!%p5570_p9), [#allocation2], %s4789_s14 }
  0xbe   : > { %4443 = dma.done.wait (%p5571_p10), %s302_s15, 3840  }
  0xbf   : > { %4445 = vsyncadd (%p5571_p10), %s302_s15, 4294963456  ;;  %s310_s0 = sand.u32 1, %s4551_s25   ;;  %s4801_s29 = scalar_lea.vmem [#allocation5], %s4789_s14 }
  0xc0   : > { %s311_s2 = scalar_lea.sflag [#allocation6], %s310_s0 }
  0xc1   : > { %4447 = dma.done.wait (%p5571_p10), %s311_s2, 3840  }
  0xc2   : > { %4449 = vsyncadd (%p5571_p10), %s311_s2, 4294963456  ;;  %p5572_p11 = scmp.eq.s32.totalorder %s4551_s25, 0 }
  0xc4   : > { %4451 = dma.done.wait (%p5572_p11), [#allocation6], 36864   ;;  %p5573_p7 = pmov %p5572_p11 }
  0xc6   : > { %4453 = vsyncadd (%p5573_p7), [#allocation6], 4294930432  ;;  %p5574_p12 = pmov %p5573_p7 }
  0xc7   : > { %p5575_p2 = pmov %p5573_p7 }
  0xc8   : > { %4455 = dma.done.wait (%p5574_p12), [#allocation9], 192  }
  0xc9   : > { %4457 = vsyncadd (%p5575_p2), [#allocation9], 4294967104  ;;  %p5576_p1 = pmov %p5575_p2 }
  0xcb   : > { %4459 = dma.done.wait (%p5576_p1), [#allocation12], 96   ;;  %p5577_p13 = pmov %p5576_p1 }
  0xcc   : > { %v3784_v0 = vld [vmem:[#allocation7 + $0x4] ss:$24 sps:$4 sm:$0xff]   ;;  %v3788_v2 = vld [vmem:[#allocation7] ss:$24 sps:$4 sm:$0xff]   ;;  %v3790_v4 = vld [vmem:[#allocation7 + $0x34] ss:$24 sps:$4 sm:$0xff]  }
  0xcd   : > { %4461 = vsyncadd (%p5577_p13), [#allocation12], 4294967200  ;;  %v3786_v1 = vld [vmem:[#allocation7 + $0x304] ss:$24 sps:$4 sm:$0xff]   ;;  %2175 = vmatprep.subr.bf16.mxu1 %v3784_v0  ;;  %v3789_v3 = vld [vmem:[#allocation7 + $0x300] ss:$24 sps:$4 sm:$0xff]  }
  0xce   : > { %2236 = vmatprep.subr.bf16.mxu0 %v3786_v1  ;;  %2176 = vmatpush1.bf16.msra.mxu1 %v3788_v2  ;;  %v3792_v5 = vld [vmem:[#allocation7 + $0x334] ss:$24 sps:$4 sm:$0xff]   ;;  %v3794_v6 = vld [vmem:[#allocation7 + $0x30] ss:$24 sps:$4 sm:$0xff]   ;;  %v3796_v8 = vld [vmem:[#allocation7 + $0x64] ss:$24 sps:$4 sm:$0xff]  }
  0xcf   : > { %2237 = vmatpush1.bf16.msra.mxu0 %v3789_v3  ;;  %2177 = vmatprep.subr.bf16.mxu1 %v3790_v4  ;;  %v3795_v7 = vld [vmem:[#allocation7 + $0x330] ss:$24 sps:$4 sm:$0xff]   ;;  %v3798_v9 = vld [vmem:[#allocation7 + $0x364] ss:$24 sps:$4 sm:$0xff]   ;;  %v3800_v10 = vld [vmem:[#allocation7 + $0x60] ss:$24 sps:$4 sm:$0xff]  }
  0xd0   : > { %2238 = vmatprep.subr.bf16.mxu0 %v3792_v5  ;;  %v3801_v11 = vld [vmem:[#allocation7 + $0x360] ss:$24 sps:$4 sm:$0xff]   ;;  %v3802_v12 = vld [vmem:[#allocation7 + $0x94] ss:$24 sps:$4 sm:$0xff]   ;;  %v3806_v14 = vld [vmem:[#allocation7 + $0x90] ss:$24 sps:$4 sm:$0xff]  }
  0xd1   : > { %v3804_v13 = vld [vmem:[#allocation7 + $0x394] ss:$24 sps:$4 sm:$0xff]   ;;  %v3807_v15 = vld [vmem:[#allocation7 + $0x390] ss:$24 sps:$4 sm:$0xff]   ;;  %v3808_v16 = vld [vmem:[#allocation7 + $0xc4] ss:$24 sps:$4 sm:$0xff]  }
  0xd2   : > { %2178 = vmatpush1.bf16.msra.mxu1 %v3794_v6  ;;  %v3810_v17 = vld [vmem:[#allocation7 + $0x3c4] ss:$24 sps:$4 sm:$0xff]   ;;  %v3812_v18 = vld [vmem:[#allocation7 + $0xc0] ss:$24 sps:$4 sm:$0xff]   ;;  %v3814_v20 = vld [vmem:[#allocation7 + $0xf4] ss:$24 sps:$4 sm:$0xff]  }
  0xd3   : > { %2239 = vmatpush1.bf16.msra.mxu0 %v3795_v7  ;;  %2179 = vmatprep.subr.bf16.mxu1 %v3796_v8  ;;  %v3813_v19 = vld [vmem:[#allocation7 + $0x3c0] ss:$24 sps:$4 sm:$0xff]   ;;  %v3816_v21 = vld [vmem:[#allocation7 + $0x3f4] ss:$24 sps:$4 sm:$0xff]   ;;  %v3818_v22 = vld [vmem:[#allocation7 + $0xf0] ss:$24 sps:$4 sm:$0xff]  }
  0xd4   : > { %2240 = vmatprep.subr.bf16.mxu0 %v3798_v9  ;;  %v3819_v23 = vld [vmem:[#allocation7 + $0x3f0] ss:$24 sps:$4 sm:$0xff]   ;;  %v3820_v24 = vld [vmem:[#allocation7 + $0x124] ss:$24 sps:$4 sm:$0xff]   ;;  %v3824_v26 = vld [vmem:[#allocation7 + $0x120] ss:$24 sps:$4 sm:$0xff]  }
  0xd5   : > { %v3822_v25 = vld [vmem:[#allocation7 + $0x424] ss:$24 sps:$4 sm:$0xff]   ;;  %v3825_v27 = vld [vmem:[#allocation7 + $0x420] ss:$24 sps:$4 sm:$0xff]   ;;  %v3826_v28 = vld [vmem:[#allocation7 + $0x154] ss:$24 sps:$4 sm:$0xff]  }
  0xd6   : > { %2180 = vmatpush1.bf16.msra.mxu1 %v3800_v10  ;;  %v3828_v29 = vld [vmem:[#allocation7 + $0x454] ss:$24 sps:$4 sm:$0xff]   ;;  %v3830_v30 = vld [vmem:[#allocation7 + $0x150] ss:$24 sps:$4 sm:$0xff]   ;;  %v3832_v32 = vld [vmem:[#allocation7 + $0x184] ss:$24 sps:$4 sm:$0xff]  }
  0xd7   : > { %2241 = vmatpush1.bf16.msra.mxu0 %v3801_v11  ;;  %2181 = vmatprep.subr.bf16.mxu1 %v3802_v12  ;;  %v3831_v31 = vld [vmem:[#allocation7 + $0x450] ss:$24 sps:$4 sm:$0xff]   ;;  %v3834_v33 = vld [vmem:[#allocation7 + $0x484] ss:$24 sps:$4 sm:$0xff]   ;;  %v3836_v34 = vld [vmem:[#allocation7 + $0x180] ss:$24 sps:$4 sm:$0xff]  }
  0xd8   : > { %2242 = vmatprep.subr.bf16.mxu0 %v3804_v13  ;;  %v3837_v35 = vld [vmem:[#allocation7 + $0x480] ss:$24 sps:$4 sm:$0xff]   ;;  %v3838_v36 = vld [vmem:[#allocation7 + $0x1b4] ss:$24 sps:$4 sm:$0xff]   ;;  %v3842_v38 = vld [vmem:[#allocation7 + $0x1b0] ss:$24 sps:$4 sm:$0xff]  }
  0xd9   : > { %v3840_v37 = vld [vmem:[#allocation7 + $0x4b4] ss:$24 sps:$4 sm:$0xff]   ;;  %v3843_v39 = vld [vmem:[#allocation7 + $0x4b0] ss:$24 sps:$4 sm:$0xff]   ;;  %v3844_v40 = vld [vmem:[#allocation7 + $0x1e4] ss:$24 sps:$4 sm:$0xff]  }
  0xda   : > { %2182 = vmatpush1.bf16.msra.mxu1 %v3806_v14  ;;  %v3846_v41 = vld [vmem:[#allocation7 + $0x4e4] ss:$24 sps:$4 sm:$0xff]   ;;  %v3848_v42 = vld [vmem:[#allocation7 + $0x1e0] ss:$24 sps:$4 sm:$0xff]   ;;  %v3850_v44 = vld [vmem:[#allocation7 + $0x214] ss:$24 sps:$4 sm:$0xff]  }
  0xdb   : > { %2243 = vmatpush1.bf16.msra.mxu0 %v3807_v15  ;;  %2183 = vmatprep.subr.bf16.mxu1 %v3808_v16  ;;  %v3849_v43 = vld [vmem:[#allocation7 + $0x4e0] ss:$24 sps:$4 sm:$0xff]   ;;  %v3852_v45 = vld [vmem:[#allocation7 + $0x514] ss:$24 sps:$4 sm:$0xff]   ;;  %v3854_v47 = vld [vmem:[#allocation7 + $0x210] ss:$24 sps:$4 sm:$0xff]  }
  0xdc   : > { %2244 = vmatprep.subr.bf16.mxu0 %v3810_v17  ;;  %v368_v46 = vld [vmem:[%s4793_s18 + $0x8] sm:$0xff]  ;;  %v374_v49 = vld [vmem:[%s4793_s18 + $0x38] sm:$0xff]  ;;  %v367_v6 = vld [vmem:[%s4793_s18] sm:$0xff]  ;;  %s5391_s27 = scalar_lea.vmem [#allocation13], %s4789_s14  ;;  %s3740_s7 = smul.u32 3840, %s4551_s25 }
  0xdd   : > { %v3855_v48 = vld [vmem:[#allocation7 + $0x510] ss:$24 sps:$4 sm:$0xff]   ;;  %v4821_v50 = vpack.c.bf16 %v374_v49, %v368_v46  ;;  %v3856_v53 = vld [vmem:[#allocation7 + $0x244] ss:$24 sps:$4 sm:$0xff]   ;;  %v3860_v56 = vld [vmem:[#allocation7 + $0x240] ss:$24 sps:$4 sm:$0xff]  }
  0xde   : > { %2184 = vmatpush1.bf16.msra.mxu1 %v3812_v18  ;;  %v370_v51 = vld [vmem:[%s4793_s18 + $0x18] sm:$0xff]  ;;  %v376_v52 = vld [vmem:[%s4793_s18 + $0x48] sm:$0xff]  ;;  %v373_v7 = vld [vmem:[%s4793_s18 + $0x30] sm:$0xff]  ;;  %s3134_s10 = sshll.u32 %s5391_s27, 4  ;;  %s5490_s30 = scalar_lea.hbm %s5550_s6, %s3740_s7  ;;  %s5492_s10 = int_to_ptr.vmem [resolvable:$true] %s3134_s10 }
  0xdf   : > { %2245 = vmatpush1.bf16.msra.mxu0 %v3813_v19  ;;  %2185 = vmatprep.subr.bf16.mxu1 %v3814_v20  ;;  %v3858_v54 = vld [vmem:[#allocation7 + $0x544] ss:$24 sps:$4 sm:$0xff]   ;;  %v4825_v55 = vpack.c.bf16 %v376_v52, %v370_v51  ;;  %v3861_v57 = vld [vmem:[#allocation7 + $0x540] ss:$24 sps:$4 sm:$0xff]   ;;  %v3862_v58 = vld [vmem:[#allocation7 + $0x274] ss:$24 sps:$4 sm:$0xff]   ;;  %v4833_v12 = vpack.c.bf16 %v373_v7, %v367_v6 }
  0xe0   : > { %2246 = vmatprep.subr.bf16.mxu0 %v3816_v21  ;;  %2207 = vmatprep.mubr.bf16.mxu1 %v4821_v50  ;;  %v3864_v59 = vld [vmem:[#allocation7 + $0x574] ss:$24 sps:$4 sm:$0xff]   ;;  %v3866_v60 = vld [vmem:[#allocation7 + $0x270] ss:$24 sps:$4 sm:$0xff]   ;;  %v3868_v62 = vld [vmem:[#allocation7 + $0x2a4] ss:$24 sps:$4 sm:$0xff]  }
  0xe1   : > { %2268 = vmatprep.mubr.bf16.mxu0 %v4825_v55  ;;  %v3867_v61 = vld [vmem:[#allocation7 + $0x570] ss:$24 sps:$4 sm:$0xff]   ;;  %v3870_v63 = vld [vmem:[#allocation7 + $0x5a4] ss:$24 sps:$4 sm:$0xff]   ;;  %v3872_v0 = vld [vmem:[#allocation7 + $0x2a0] ss:$24 sps:$4 sm:$0xff]  }
  0xe2   : > { %2186 = vmatpush1.bf16.msra.mxu1 %v3818_v22  ;;  %v3873_v1 = vld [vmem:[#allocation7 + $0x5a0] ss:$24 sps:$4 sm:$0xff]   ;;  %v3874_v2 = vld [vmem:[#allocation7 + $0x2d4] ss:$24 sps:$4 sm:$0xff]   ;;  %v3878_v4 = vld [vmem:[#allocation7 + $0x2d0] ss:$24 sps:$4 sm:$0xff]  }
  0xe3   : > { %2247 = vmatpush1.bf16.msra.mxu0 %v3819_v23  ;;  %2187 = vmatprep.subr.bf16.mxu1 %v3820_v24  ;;  %v3876_v3 = vld [vmem:[#allocation7 + $0x5d4] ss:$24 sps:$4 sm:$0xff]   ;;  %v3879_v5 = vld [vmem:[#allocation7 + $0x5d0] ss:$24 sps:$4 sm:$0xff]   ;;  %v3882_v8 = vld [vmem:[#allocation7 + $0x604] ss:$24 sps:$4 sm:$0xff]  }
  0xe4   : > { %2248 = vmatprep.subr.bf16.mxu0 %v3822_v25  ;;  %v369_v9 = vld [vmem:[%s4793_s18 + $0x10] sm:$0xff]  ;;  %v375_v10 = vld [vmem:[%s4793_s18 + $0x40] sm:$0xff]  ;;  %v392_v51 = vld [vmem:[%s4793_s18 + $0xc8] sm:$0xff]  ;;  %s3120_s13 = scalar_lea.sflag [#allocation4], %s4786_s3  ;;  %s4398_s26 = scalar_lea.vmem %s5492_s10, 3840 }
  0xe5   : > { %v3885_v11 = vld [vmem:[#allocation7 + $0xc] ss:$24 sps:$4 sm:$0xff]   ;;  %v3880_v13 = vld [vmem:[#allocation7 + $0x600] ss:$24 sps:$4 sm:$0xff]   ;;  %v4835_v15 = vpack.c.bf16 %v375_v10, %v369_v9  ;;  %v3891_v17 = vld [vmem:[#allocation7 + $0x3c] ss:$24 sps:$4 sm:$0xff]   ;;  %p4399_p0 = scmp.ne.s32.totalorder %s5492_s10, %s4398_s26 }
  0xe6   : > { %2188 = vmatpush1.bf16.msra.mxu1 %v3824_v26  ;;  %v3883_v14 = vld [vmem:[#allocation7 + $0x8] ss:$24 sps:$4 sm:$0xff]   ;;  %v3888_v16 = vld [vmem:[#allocation7 + $0x634] ss:$24 sps:$4 sm:$0xff]   ;;  %v3889_v19 = vld [vmem:[#allocation7 + $0x38] ss:$24 sps:$4 sm:$0xff]  }
  0xe7   : > { %2249 = vmatpush1.bf16.msra.mxu0 %v3825_v27  ;;  %2189 = vmatprep.subr.bf16.mxu1 %v3826_v28  ;;  %v3886_v18 = vld [vmem:[#allocation7 + $0x630] ss:$24 sps:$4 sm:$0xff]   ;;  %v3894_v20 = vld [vmem:[#allocation7 + $0x664] ss:$24 sps:$4 sm:$0xff]   ;;  %v3892_v22 = vld [vmem:[#allocation7 + $0x660] ss:$24 sps:$4 sm:$0xff]   ;;  %p4400_p6 = pnand %p4399_p0, %p4690_p5 }
  0xe8   : > { %2250 = vmatprep.subr.bf16.mxu0 %v3828_v29  ;;  %v3897_v21 = vld [vmem:[#allocation7 + $0x6c] ss:$24 sps:$4 sm:$0xff]   ;;  %v3895_v23 = vld [vmem:[#allocation7 + $0x68] ss:$24 sps:$4 sm:$0xff]   ;;  %v3903_v25 = vld [vmem:[#allocation7 + $0x9c] ss:$24 sps:$4 sm:$0xff]  }
  0xe9   : > { %v3900_v24 = vld [vmem:[#allocation7 + $0x694] ss:$24 sps:$4 sm:$0xff]   ;;  %v3898_v26 = vld [vmem:[#allocation7 + $0x690] ss:$24 sps:$4 sm:$0xff]   ;;  %v3906_v28 = vld [vmem:[#allocation7 + $0x6c4] ss:$24 sps:$4 sm:$0xff]   ;;  %p4401_p4 = pneg %p4400_p6 }
  0xea   : > { %2190 = vmatpush1.bf16.msra.mxu1 %v3830_v30  ;;  %v3901_v27 = vld [vmem:[#allocation7 + $0x98] ss:$24 sps:$4 sm:$0xff]   ;;  %v3909_v29 = vld [vmem:[#allocation7 + $0xcc] ss:$24 sps:$4 sm:$0xff]   ;;  %v3939_v10 = vld [vmem:[#allocation7 + $0x1bc] ss:$24 sps:$4 sm:$0xff]  }
  0xeb   : > { %2251 = vmatpush1.bf16.msra.mxu0 %v3831_v31  ;;  %2191 = vmatprep.subr.bf16.mxu1 %v3832_v32  ;;  %v380_v30 = vld [vmem:[%s4793_s18 + $0x68] sm:$0xff]  ;;  %v386_v31 = vld [vmem:[%s4793_s18 + $0x98] sm:$0xff]  ;;  %s4492_s11 = smov [#allocation13]  }
  0xec   : > { %2252 = vmatprep.subr.bf16.mxu0 %v3834_v33  ;;  %v3904_v32 = vld [vmem:[#allocation7 + $0x6c0] ss:$24 sps:$4 sm:$0xff]   ;;  %v3910_v46 = vld [vmem:[#allocation7 + $0x6f0] ss:$24 sps:$4 sm:$0xff]   ;;  %v3921_v49 = vld [vmem:[#allocation7 + $0x12c] ss:$24 sps:$4 sm:$0xff]  }
  0xed   : > { %v3907_v33 = vld [vmem:[#allocation7 + $0xc8] ss:$24 sps:$4 sm:$0xff]   ;;  %v3936_v9 = vld [vmem:[#allocation7 + $0x7b4] ss:$24 sps:$4 sm:$0xff]   ;;  %s4402_s12 = sshll.u32 %s4492_s11, 4  ;;  %s4403_s12 = int_to_ptr.vmem [resolvable:$false] %s4402_s12 }
  0xee   : > { %2192 = vmatpush1.bf16.msra.mxu1 %v3836_v34  ;;  %v4841_v34 = vpack.c.bf16 %v386_v31, %v380_v30  ;;  %v394_v52 = vld [vmem:[%s4793_s18 + $0xd8] sm:$0xff]  ;;  %s4404_s17 = scalar_lea.vmem %s4403_s12, 7680  ;;  %p4405_p8 = scmp.lt.s32.totalorder %s5492_s10, %s4403_s12 }
  0xef   : > { %2253 = vmatpush1.bf16.msra.mxu0 %v3837_v35  ;;  %2193 = vmatprep.subr.bf16.mxu1 %v3838_v36  ;;  %v382_v35 = vld [vmem:[%s4793_s18 + $0x78] sm:$0xff]  ;;  %v388_v36 = vld [vmem:[%s4793_s18 + $0xa8] sm:$0xff]  ;;  %p4406_p3 = scmp.lt.s32.totalorder %s4404_s17, %s4398_s26 }
  0xf0   : > { %2254 = vmatprep.subr.bf16.mxu0 %v3840_v37  ;;  %v379_v37 = vld [vmem:[%s4793_s18 + $0x60] sm:$0xff] }
  0xf1   : > { %v3928_v7 = vld [vmem:[#allocation7 + $0x780] ss:$24 sps:$4 sm:$0xff]   ;;  %v3966_v31 = vld [vmem:[#allocation7 + $0x8a4] ss:$24 sps:$4 sm:$0xff]   ;;  %p4407_p9 = por %p4406_p3, %p4405_p8 }
  0xf2   : > { %2194 = vmatpush1.bf16.msra.mxu1 %v3842_v38  ;;  %v4846_v38 = vpack.c.bf16 %v388_v36, %v382_v35  ;;  %v3961_v30 = vld [vmem:[#allocation7 + $0x278] ss:$24 sps:$4 sm:$0xff]   ;;  %v3967_v35 = vld [vmem:[#allocation7 + $0x2a8] ss:$24 sps:$4 sm:$0xff]   ;;  %v3972_v36 = vld [vmem:[#allocation7 + $0x8d4] ss:$24 sps:$4 sm:$0xff]  }
  0xf3   : > { %2255 = vmatpush1.bf16.msra.mxu0 %v3843_v39  ;;  %2195 = vmatprep.subr.bf16.mxu1 %v3844_v40  ;;  %v385_v39 = vld [vmem:[%s4793_s18 + $0x90] sm:$0xff]  ;;  %p4408_p10 = pnand %p4407_p9, %p4401_p4 }
  0xf4   : > { %2256 = vmatprep.subr.bf16.mxu0 %v3846_v41  ;;  %v381_v40 = vld [vmem:[%s4793_s18 + $0x70] sm:$0xff]  ;;  %v387_v41 = vld [vmem:[%s4793_s18 + $0xa0] sm:$0xff] }
  0xf6   : > { %2196 = vmatpush1.bf16.msra.mxu1 %v3848_v42  ;;  %v3912_v42 = vld [vmem:[#allocation7 + $0x6f4] ss:$24 sps:$4 sm:$0xff]  }
  0xf7   : > { %2257 = vmatpush1.bf16.msra.mxu0 %v3849_v43  ;;  %2197 = vmatprep.subr.bf16.mxu1 %v3850_v44  ;;  %v4851_v43 = vpack.c.bf16 %v385_v39, %v379_v37  ;;  %v4853_v44 = vpack.c.bf16 %v387_v41, %v381_v40  ;;  %v3975_v37 = vld [vmem:[#allocation7 + $0x2dc] ss:$24 sps:$4 sm:$0xff]   ;;  %v3970_v39 = vld [vmem:[#allocation7 + $0x8d0] ss:$24 sps:$4 sm:$0xff]  }
  0xf8   : > { %2258 = vmatprep.subr.bf16.mxu0 %v3852_v45  ;;  %v3915_v45 = vld [vmem:[#allocation7 + $0xfc] ss:$24 sps:$4 sm:$0xff]   ;;  %v3973_v40 = vld [vmem:[#allocation7 + $0x2d8] ss:$24 sps:$4 sm:$0xff]  }
  0xf9   : > { %v371_v41 = vld [vmem:[%s4793_s18 + $0x20] sm:$0xff] }
  0xfa   : > { %2198 = vmatpush1.bf16.msra.mxu1 %v3854_v47  ;;  %v3913_v47 = vld [vmem:[#allocation7 + $0xf8] ss:$24 sps:$4 sm:$0xff]  }
  0xfb   : > { %2259 = vmatpush1.bf16.msra.mxu0 %v3855_v48  ;;  %2199 = vmatprep.subr.bf16.mxu1 %v3856_v53  ;;  %v3918_v48 = vld [vmem:[#allocation7 + $0x724] ss:$24 sps:$4 sm:$0xff]   ;;  %v4861_v53 = vpack.c.bf16 %v392_v51, %v392_v51  ;;  %v3976_v51 = vld [vmem:[#allocation7 + $0x308] ss:$24 sps:$4 sm:$0xff]  }
  0xfc   : > { %2260 = vmatprep.subr.bf16.mxu0 %v3858_v54  ;;  %v4863_v54 = vpack.c.bf16 %v394_v52, %v394_v52  ;;  %v3979_v52 = vld [vmem:[#allocation7 + $0x10] ss:$24 sps:$4 sm:$0xff]  }
  0xfe   : > { %2200 = vmatpush1.bf16.msra.mxu1 %v3860_v56  ;;  %v391_v56 = vld [vmem:[%s4793_s18 + $0xc0] sm:$0xff] }
  0xff   : > { %2261 = vmatpush1.bf16.msra.mxu0 %v3861_v57  ;;  %2201 = vmatprep.subr.bf16.mxu1 %v3862_v58  ;;  %v393_v57 = vld [vmem:[%s4793_s18 + $0xd0] sm:$0xff] }
 0x100   : > { %2262 = vmatprep.subr.bf16.mxu0 %v3864_v59  ;;  %v3916_v58 = vld [vmem:[#allocation7 + $0x720] ss:$24 sps:$4 sm:$0xff]  }
 0x101   : > { %v3919_v59 = vld [vmem:[#allocation7 + $0x128] ss:$24 sps:$4 sm:$0xff]  }
 0x102   : > { %2202 = vmatpush1.bf16.msra.mxu1 %v3866_v60  ;;  %v4867_v60 = vpack.c.bf16 %v391_v56, %v391_v56  ;;  %v3984_v56 = vld [vmem:[#allocation7 + $0x33c] ss:$24 sps:$4 sm:$0xff]  }
 0x103   : > { %2263 = vmatpush1.bf16.msra.mxu0 %v3867_v61  ;;  %2203 = vmatprep.subr.bf16.mxu1 %v3868_v62  ;;  %v4869_v61 = vpack.c.bf16 %v393_v57, %v393_v57  ;;  %v3924_v62 = vld [vmem:[#allocation7 + $0x754] ss:$24 sps:$4 sm:$0xff]   ;;  %v3987_v57 = vld [vmem:[#allocation7 + $0x44] ss:$24 sps:$4 sm:$0xff]  }
 0x104   : > { %2264 = vmatprep.subr.bf16.mxu0 %v3870_v63  ;;  %v3927_v63 = vld [vmem:[#allocation7 + $0x15c] ss:$24 sps:$4 sm:$0xff]  }
 0x106   : > { %2204 = vmatpush1.bf16.msra.mxu1 %v3872_v0  ;;  %v3922_v0 = vld [vmem:[#allocation7 + $0x750] ss:$24 sps:$4 sm:$0xff]  }
 0x107   : > { %2265 = vmatpush1.bf16.msra.mxu0 %v3873_v1  ;;  %2205 = vmatprep.subr.bf16.mxu1 %v3874_v2  ;;  %v3925_v1 = vld [vmem:[#allocation7 + $0x158] ss:$24 sps:$4 sm:$0xff]   ;;  %v3930_v2 = vld [vmem:[#allocation7 + $0x784] ss:$24 sps:$4 sm:$0xff]  }
 0x108   : > { %2266 = vmatprep.subr.bf16.mxu0 %v3876_v3  ;;  %v372_v3 = vld [vmem:[%s4793_s18 + $0x28] sm:$0xff] }
 0x10a   : > { %2206 = vmatpush1.bf16.msra.mxu1 %v3878_v4  ;;  %v378_v4 = vld [vmem:[%s4793_s18 + $0x58] sm:$0xff] }
 0x10b   : > { %2267 = vmatpush1.bf16.msra.mxu0 %v3879_v5  ;;  %2358 = vmatprep.subr.bf16.mxu1 %v3885_v11  ;;  %v3933_v5 = vld [vmem:[#allocation7 + $0x18c] ss:$24 sps:$4 sm:$0xff]   ;;  %v4877_v6 = vpack.c.bf16 %v378_v4, %v372_v3  ;;  %v3934_v11 = vld [vmem:[#allocation7 + $0x7b0] ss:$24 sps:$4 sm:$0xff]  }
 0x10c   : > { %2297 = vmatprep.subr.bf16.mxu0 %v3882_v8  ;;  %v3931_v8 = vld [vmem:[#allocation7 + $0x188] ss:$24 sps:$4 sm:$0xff]  }
 0x10d   : > { %2208 = vmatmul.mubr.bf16.vlgmr.msra.gmra.mrb[0].mxu1 %v4833_v12  ;;  %v396_v4 = vld [vmem:[%s4793_s18 + $0xe8] sm:$0xff] }
 0x10e   : > { %2269 = vmatmul.mubr.bf16.vlgmr.msra.gmra.mrb[0].mxu0 %v4835_v15  ;;  %2359 = vmatpush1.bf16.msra.mxu1 %v3883_v14  ;;  %v3942_v14 = vld [vmem:[#allocation7 + $0x7e4] ss:$24 sps:$4 sm:$0xff]  }
 0x10f   : > { %2298 = vmatpush1.bf16.msra.mxu0 %v3880_v13  ;;  %2360 = vmatprep.subr.bf16.mxu1 %v3891_v17  ;;  %v3937_v13 = vld [vmem:[#allocation7 + $0x1b8] ss:$24 sps:$4 sm:$0xff]  }
 0x110   : > { %2299 = vmatprep.subr.bf16.mxu0 %v3888_v16  ;;  %2217 = vmatprep.mubr.bf16.mxu1 %v4841_v34  ;;  %v3945_v16 = vld [vmem:[#allocation7 + $0x1ec] ss:$24 sps:$4 sm:$0xff]   ;;  %v3940_v17 = vld [vmem:[#allocation7 + $0x7e0] ss:$24 sps:$4 sm:$0xff]  }
 0x111   : > { %2278 = vmatprep.mubr.bf16.mxu0 %v4846_v38 }
 0x112   : > { %2361 = vmatpush1.bf16.msra.mxu1 %v3889_v19  ;;  %v3948_v19 = vld [vmem:[#allocation7 + $0x814] ss:$24 sps:$4 sm:$0xff]  }
 0x113   : > { %2300 = vmatpush1.bf16.msra.mxu0 %v3886_v18  ;;  %2362 = vmatprep.subr.bf16.mxu1 %v3897_v21  ;;  %v3943_v18 = vld [vmem:[#allocation7 + $0x1e8] ss:$24 sps:$4 sm:$0xff]  }
 0x114   : > { %2301 = vmatprep.subr.bf16.mxu0 %v3894_v20  ;;  %v3951_v20 = vld [vmem:[#allocation7 + $0x21c] ss:$24 sps:$4 sm:$0xff]   ;;  %v3946_v21 = vld [vmem:[#allocation7 + $0x810] ss:$24 sps:$4 sm:$0xff]  }
 0x115   : > { %2218 = vmatmul.mubr.bf16.gmra.mrb[4].mxu1 %v4851_v43 }
 0x116   : > { %2363 = vmatpush1.bf16.msra.mxu1 %v3895_v23  ;;  %2279 = vmatmul.mubr.bf16.gmra.mrb[4].mxu0 %v4853_v44  ;;  %v3954_v23 = vld [vmem:[#allocation7 + $0x844] ss:$24 sps:$4 sm:$0xff]  }
 0x117   : > { %2302 = vmatpush1.bf16.msra.mxu0 %v3892_v22  ;;  %2364 = vmatprep.subr.bf16.mxu1 %v3903_v25  ;;  %v3949_v22 = vld [vmem:[#allocation7 + $0x218] ss:$24 sps:$4 sm:$0xff]  }
 0x118   : > { %2303 = vmatprep.subr.bf16.mxu0 %v3900_v24  ;;  %2227 = vmatprep.mubr.bf16.mxu1 %v4861_v53  ;;  %v3957_v24 = vld [vmem:[#allocation7 + $0x24c] ss:$24 sps:$4 sm:$0xff]   ;;  %v3952_v25 = vld [vmem:[#allocation7 + $0x840] ss:$24 sps:$4 sm:$0xff]  }
 0x119   : > { %2288 = vmatprep.mubr.bf16.mxu0 %v4863_v54 }
 0x11a   : > { %2365 = vmatpush1.bf16.msra.mxu1 %v3901_v27  ;;  %v3960_v27 = vld [vmem:[#allocation7 + $0x874] ss:$24 sps:$4 sm:$0xff]  }
 0x11b   : > { %2304 = vmatpush1.bf16.msra.mxu0 %v3898_v26  ;;  %2366 = vmatprep.subr.bf16.mxu1 %v3909_v29  ;;  %v3955_v26 = vld [vmem:[#allocation7 + $0x248] ss:$24 sps:$4 sm:$0xff]  }
 0x11c   : > { %2305 = vmatprep.subr.bf16.mxu0 %v3906_v28  ;;  %v3963_v28 = vld [vmem:[#allocation7 + $0x27c] ss:$24 sps:$4 sm:$0xff]   ;;  %v3958_v29 = vld [vmem:[#allocation7 + $0x870] ss:$24 sps:$4 sm:$0xff]  }
 0x11d   : > { %2228 = vmatmul.mubr.bf16.gmra.mrb[8].mxu1 %v4867_v60 }
 0x11e   : > { %2367 = vmatpush1.bf16.msra.mxu1 %v3907_v33  ;;  %2289 = vmatmul.mubr.bf16.gmra.mrb[8].mxu0 %v4869_v61  ;;  %v3964_v33 = vld [vmem:[#allocation7 + $0x8a0] ss:$24 sps:$4 sm:$0xff]  }
 0x11f   : > { %2306 = vmatpush1.bf16.msra.mxu0 %v3904_v32  ;;  %2368 = vmatprep.subr.bf16.mxu1 %v3915_v45  ;;  %v3969_v32 = vld [vmem:[#allocation7 + $0x2ac] ss:$24 sps:$4 sm:$0xff]  }
 0x120   : > { %2307 = vmatprep.subr.bf16.mxu0 %v3912_v42  ;;  %2390 = vmatprep.mubr.bf16.mxu1 %v4821_v50  ;;  %v377_v42 = vld [vmem:[%s4793_s18 + $0x50] sm:$0xff] }
 0x121   : > { %2329 = vmatprep.mubr.bf16.mxu0 %v4877_v6  ;;  %v3978_v45 = vld [vmem:[#allocation7 + $0x30c] ss:$24 sps:$4 sm:$0xff]  }
 0x122   : > { %2369 = vmatpush1.bf16.msra.mxu1 %v3913_v47  ;;  %v384_v47 = vld [vmem:[%s4793_s18 + $0x88] sm:$0xff] }
 0x123   : > { %2308 = vmatpush1.bf16.msra.mxu0 %v3910_v46  ;;  %2370 = vmatprep.subr.bf16.mxu1 %v3921_v49  ;;  %v3981_v46 = vld [vmem:[#allocation7 + $0x14] ss:$24 sps:$4 sm:$0xff]  }
 0x124   : > { %2309 = vmatprep.subr.bf16.mxu0 %v3918_v48  ;;  %v4884_v48 = vpack.c.bf16 %v377_v42, %v371_v41  ;;  %v390_v49 = vld [vmem:[%s4793_s18 + $0xb8] sm:$0xff] }
 0x125   : > { %v4033_v41 = vld [vmem:[#allocation7 + $0x1c0] ss:$24 sps:$4 sm:$0xff]   ;;  %v4038_v42 = vld [vmem:[#allocation7 + $0x4ec] ss:$24 sps:$4 sm:$0xff]  }
 0x126   : > { %2371 = vmatpush1.bf16.msra.mxu1 %v3919_v59  ;;  %v4887_v59 = vpack.c.bf16 %v390_v49, %v384_v47  ;;  %v4039_v47 = vld [vmem:[#allocation7 + $0x1f0] ss:$24 sps:$4 sm:$0xff]   ;;  %v4044_v49 = vld [vmem:[#allocation7 + $0x51c] ss:$24 sps:$4 sm:$0xff]  }
 0x127   : > { %2310 = vmatpush1.bf16.msra.mxu0 %v3916_v58  ;;  %2372 = vmatprep.subr.bf16.mxu1 %v3927_v63  ;;  %v3982_v58 = vld [vmem:[#allocation7 + $0x338] ss:$24 sps:$4 sm:$0xff]  }
 0x128   : > { %2311 = vmatprep.subr.bf16.mxu0 %v3924_v62  ;;  %v3985_v62 = vld [vmem:[#allocation7 + $0x40] ss:$24 sps:$4 sm:$0xff]  }
 0x129   : > { %v383_v63 = vld [vmem:[%s4793_s18 + $0x80] sm:$0xff] }
 0x12a   : > { %2373 = vmatpush1.bf16.msra.mxu1 %v3925_v1  ;;  %v3990_v1 = vld [vmem:[#allocation7 + $0x36c] ss:$24 sps:$4 sm:$0xff]  }
 0x12b   : > { %2312 = vmatpush1.bf16.msra.mxu0 %v3922_v0  ;;  %2374 = vmatprep.subr.bf16.mxu1 %v3933_v5  ;;  %v389_v0 = vld [vmem:[%s4793_s18 + $0xb0] sm:$0xff] }
 0x12c   : > { %2313 = vmatprep.subr.bf16.mxu0 %v3930_v2  ;;  %v3993_v2 = vld [vmem:[#allocation7 + $0x74] ss:$24 sps:$4 sm:$0xff]   ;;  %v4895_v3 = vpack.c.bf16 %v389_v0, %v383_v63  ;;  %v3988_v5 = vld [vmem:[#allocation7 + $0x368] ss:$24 sps:$4 sm:$0xff]  }
 0x12d   : > { %v4051_v63 = vld [vmem:[#allocation7 + $0x250] ss:$24 sps:$4 sm:$0xff]   ;;  %v4056_v0 = vld [vmem:[#allocation7 + $0x57c] ss:$24 sps:$4 sm:$0xff]  }
 0x12e   : > { %2375 = vmatpush1.bf16.msra.mxu1 %v3931_v8  ;;  %v3996_v8 = vld [vmem:[#allocation7 + $0x39c] ss:$24 sps:$4 sm:$0xff]  }
 0x12f   : > { %2314 = vmatpush1.bf16.msra.mxu0 %v3928_v7  ;;  %2376 = vmatprep.subr.bf16.mxu1 %v3939_v10  ;;  %v3991_v7 = vld [vmem:[#allocation7 + $0x70] ss:$24 sps:$4 sm:$0xff]   ;;  %v4898_v10 = vpack.c.bf16 %v396_v4, %v396_v4  ;;  %v4057_v4 = vld [vmem:[#allocation7 + $0x280] ss:$24 sps:$4 sm:$0xff]  }
 0x130   : > { %2315 = vmatprep.subr.bf16.mxu0 %v3936_v9  ;;  %v3999_v9 = vld [vmem:[#allocation7 + $0xa4] ss:$24 sps:$4 sm:$0xff]  }
 0x132   : > { %2377 = vmatpush1.bf16.msra.mxu1 %v3937_v13  ;;  %v3997_v13 = vld [vmem:[#allocation7 + $0xa0] ss:$24 sps:$4 sm:$0xff]  }
 0x133   : > { %2316 = vmatpush1.bf16.msra.mxu0 %v3934_v11  ;;  %2378 = vmatprep.subr.bf16.mxu1 %v3945_v16  ;;  %v3994_v11 = vld [vmem:[#allocation7 + $0x398] ss:$24 sps:$4 sm:$0xff]   ;;  %v4002_v16 = vld [vmem:[#allocation7 + $0x3cc] ss:$24 sps:$4 sm:$0xff]  }
 0x134   : > { %2317 = vmatprep.subr.bf16.mxu0 %v3942_v14  ;;  %v395_v14 = vld [vmem:[%s4793_s18 + $0xe0] sm:$0xff] }
 0x136   : > { %2379 = vmatpush1.bf16.msra.mxu1 %v3943_v18  ;;  %v4905_v18 = vpack.c.bf16 %v395_v14, %v395_v14  ;;  %v4066_v14 = vld [vmem:[#allocation7 + $0x5d8] ss:$24 sps:$4 sm:$0xff]  }
 0x137   : > { %2318 = vmatpush1.bf16.msra.mxu0 %v3940_v17  ;;  %2380 = vmatprep.subr.bf16.mxu1 %v3951_v20  ;;  %v4005_v17 = vld [vmem:[#allocation7 + $0xd4] ss:$24 sps:$4 sm:$0xff]   ;;  %v4003_v20 = vld [vmem:[#allocation7 + $0xd0] ss:$24 sps:$4 sm:$0xff]  }
 0x138   : > { %2319 = vmatprep.subr.bf16.mxu0 %v3948_v19  ;;  %v4000_v19 = vld [vmem:[#allocation7 + $0x3c8] ss:$24 sps:$4 sm:$0xff]  }
 0x13a   : > { %2381 = vmatpush1.bf16.msra.mxu1 %v3949_v22  ;;  %v4011_v22 = vld [vmem:[#allocation7 + $0x104] ss:$24 sps:$4 sm:$0xff]  }
 0x13b   : > { %2320 = vmatpush1.bf16.msra.mxu0 %v3946_v21  ;;  %2382 = vmatprep.subr.bf16.mxu1 %v3957_v24  ;;  %v4008_v21 = vld [vmem:[#allocation7 + $0x3fc] ss:$24 sps:$4 sm:$0xff]   ;;  %v4009_v24 = vld [vmem:[#allocation7 + $0x100] ss:$24 sps:$4 sm:$0xff]  }
 0x13c   : > { %2321 = vmatprep.subr.bf16.mxu0 %v3954_v23  ;;  %v4006_v23 = vld [vmem:[#allocation7 + $0x3f8] ss:$24 sps:$4 sm:$0xff]  }
 0x13e   : > { %2383 = vmatpush1.bf16.msra.mxu1 %v3955_v26  ;;  %v4017_v26 = vld [vmem:[#allocation7 + $0x134] ss:$24 sps:$4 sm:$0xff]  }
 0x13f   : > { %2322 = vmatpush1.bf16.msra.mxu0 %v3952_v25  ;;  %2384 = vmatprep.subr.bf16.mxu1 %v3963_v28  ;;  %v4014_v25 = vld [vmem:[#allocation7 + $0x42c] ss:$24 sps:$4 sm:$0xff]   ;;  %v4015_v28 = vld [vmem:[#allocation7 + $0x130] ss:$24 sps:$4 sm:$0xff]  }
 0x140   : > { %2323 = vmatprep.subr.bf16.mxu0 %v3960_v27  ;;  %v4012_v27 = vld [vmem:[#allocation7 + $0x428] ss:$24 sps:$4 sm:$0xff]  }
 0x142   : > { %2385 = vmatpush1.bf16.msra.mxu1 %v3961_v30  ;;  %v4023_v30 = vld [vmem:[#allocation7 + $0x164] ss:$24 sps:$4 sm:$0xff]  }
 0x143   : > { %2324 = vmatpush1.bf16.msra.mxu0 %v3958_v29  ;;  %2386 = vmatprep.subr.bf16.mxu1 %v3969_v32  ;;  %v4020_v29 = vld [vmem:[#allocation7 + $0x45c] ss:$24 sps:$4 sm:$0xff]   ;;  %v4021_v32 = vld [vmem:[#allocation7 + $0x160] ss:$24 sps:$4 sm:$0xff]  }
 0x144   : > { %2325 = vmatprep.subr.bf16.mxu0 %v3966_v31  ;;  %v4018_v31 = vld [vmem:[#allocation7 + $0x458] ss:$24 sps:$4 sm:$0xff]  }
 0x146   : > { %2387 = vmatpush1.bf16.msra.mxu1 %v3967_v35  ;;  %v4029_v35 = vld [vmem:[#allocation7 + $0x194] ss:$24 sps:$4 sm:$0xff]  }
 0x147   : > { %2326 = vmatpush1.bf16.msra.mxu0 %v3964_v33  ;;  %2388 = vmatprep.subr.bf16.mxu1 %v3975_v37  ;;  %v4026_v33 = vld [vmem:[#allocation7 + $0x48c] ss:$24 sps:$4 sm:$0xff]   ;;  %v4032_v37 = vld [vmem:[#allocation7 + $0x4bc] ss:$24 sps:$4 sm:$0xff]  }
 0x148   : > { %2327 = vmatprep.subr.bf16.mxu0 %v3972_v36  ;;  %v4024_v36 = vld [vmem:[#allocation7 + $0x488] ss:$24 sps:$4 sm:$0xff]  }
 0x14a   : > { %2389 = vmatpush1.bf16.msra.mxu1 %v3973_v40  ;;  %v4030_v40 = vld [vmem:[#allocation7 + $0x4b8] ss:$24 sps:$4 sm:$0xff]  }
 0x14b   : > { %2328 = vmatpush1.bf16.msra.mxu0 %v3970_v39  ;;  %2419 = vmatprep.subr.bf16.mxu1 %v3978_v45  ;;  %v4035_v39 = vld [vmem:[#allocation7 + $0x1c4] ss:$24 sps:$4 sm:$0xff]   ;;  %v4041_v45 = vld [vmem:[#allocation7 + $0x1f4] ss:$24 sps:$4 sm:$0xff]  }
 0x14c   : > { %2541 = vmatprep.subr.bf16.mxu0 %v3981_v46  ;;  %v4036_v46 = vld [vmem:[#allocation7 + $0x4e8] ss:$24 sps:$4 sm:$0xff]  }
 0x14d   : > { %2391 = vmatmul.mubr.bf16.vlgmr.msra.gmra.mrb[12].mxu1 %v4833_v12 }
 0x14e   : > { %2330 = vmatmul.mubr.bf16.vlgmr.msra.gmra.mrb[0].mxu0 %v4884_v48  ;;  %2420 = vmatpush1.bf16.msra.mxu1 %v3976_v51  ;;  %v4047_v51 = vld [vmem:[#allocation7 + $0x224] ss:$24 sps:$4 sm:$0xff]  }
 0x14f   : > { %2542 = vmatpush1.bf16.msra.mxu0 %v3979_v52  ;;  %2421 = vmatprep.subr.bf16.mxu1 %v3984_v56  ;;  %v4042_v52 = vld [vmem:[#allocation7 + $0x518] ss:$24 sps:$4 sm:$0xff]  }
 0x150   : > { %2543 = vmatprep.subr.bf16.mxu0 %v3987_v57  ;;  %2339 = vmatprep.mubr.bf16.mxu0 %v4887_v59  ;;  %v4045_v56 = vld [vmem:[#allocation7 + $0x220] ss:$24 sps:$4 sm:$0xff]   ;;  %v4050_v57 = vld [vmem:[#allocation7 + $0x54c] ss:$24 sps:$4 sm:$0xff]  }
 0x151   : > { %2400 = vmatprep.mubr.bf16.mxu1 %v4841_v34 }
 0x152   : > { %2422 = vmatpush1.bf16.msra.mxu1 %v3982_v58  ;;  %v4053_v58 = vld [vmem:[#allocation7 + $0x254] ss:$24 sps:$4 sm:$0xff]  }
 0x153   : > { %2544 = vmatpush1.bf16.msra.mxu0 %v3985_v62  ;;  %2423 = vmatprep.subr.bf16.mxu1 %v3990_v1  ;;  %v4048_v62 = vld [vmem:[#allocation7 + $0x548] ss:$24 sps:$4 sm:$0xff]   ;;  %v4059_v1 = vld [vmem:[#allocation7 + $0x284] ss:$24 sps:$4 sm:$0xff]  }
 0x154   : > { %2545 = vmatprep.subr.bf16.mxu0 %v3993_v2  ;;  %v4054_v2 = vld [vmem:[#allocation7 + $0x578] ss:$24 sps:$4 sm:$0xff]  }
 0x155   : > { %2401 = vmatmul.mubr.bf16.gmra.mrb[16].mxu1 %v4851_v43 }
 0x156   : > { %2340 = vmatmul.mubr.bf16.gmra.mrb[4].mxu0 %v4895_v3  ;;  %2424 = vmatpush1.bf16.msra.mxu1 %v3988_v5  ;;  %v4062_v5 = vld [vmem:[#allocation7 + $0x5ac] ss:$24 sps:$4 sm:$0xff]  }
 0x157   : > { %2546 = vmatpush1.bf16.msra.mxu0 %v3991_v7  ;;  %2425 = vmatprep.subr.bf16.mxu1 %v3996_v8  ;;  %v4065_v7 = vld [vmem:[#allocation7 + $0x2b4] ss:$24 sps:$4 sm:$0xff]   ;;  %v4060_v8 = vld [vmem:[#allocation7 + $0x5a8] ss:$24 sps:$4 sm:$0xff]  }
 0x158   : > { %2547 = vmatprep.subr.bf16.mxu0 %v3999_v9  ;;  %2349 = vmatprep.mubr.bf16.mxu0 %v4898_v10  ;;  %v4063_v9 = vld [vmem:[#allocation7 + $0x2b0] ss:$24 sps:$4 sm:$0xff]  }
 0x159   : > { %2410 = vmatprep.mubr.bf16.mxu1 %v4861_v53 }
 0x15a   : > { %2426 = vmatpush1.bf16.msra.mxu1 %v3994_v11  ;;  %v4068_v11 = vld [vmem:[#allocation7 + $0x5dc] ss:$24 sps:$4 sm:$0xff]  }
 0x15b   : > { %2548 = vmatpush1.bf16.msra.mxu0 %v3997_v13  ;;  %2427 = vmatprep.subr.bf16.mxu1 %v4002_v16  ;;  %v4071_v13 = vld [vmem:[#allocation7 + $0x2e4] ss:$24 sps:$4 sm:$0xff]   ;;  %v4069_v16 = vld [vmem:[#allocation7 + $0x2e0] ss:$24 sps:$4 sm:$0xff]  }
 0x15c   : > { %2549 = vmatprep.subr.bf16.mxu0 %v4005_v17  ;;  %v4074_v17 = vld [vmem:[#allocation7 + $0x60c] ss:$24 sps:$4 sm:$0xff]  }
 0x15d   : > { %2411 = vmatmul.mubr.bf16.gmra.mrb[20].mxu1 %v4867_v60 }
 0x15e   : > { %2350 = vmatmul.mubr.bf16.gmra.mrb[12].mxu0 %v4905_v18  ;;  %2428 = vmatpush1.bf16.msra.mxu1 %v4000_v19  ;;  %v4077_v19 = vld [vmem:[#allocation7 + $0x314] ss:$24 sps:$4 sm:$0xff]  }
 0x15f   : > { %2550 = vmatpush1.bf16.msra.mxu0 %v4003_v20  ;;  %2429 = vmatprep.subr.bf16.mxu1 %v4008_v21  ;;  %v4072_v20 = vld [vmem:[#allocation7 + $0x608] ss:$24 sps:$4 sm:$0xff]  }
 0x160   : > { %2551 = vmatprep.subr.bf16.mxu0 %v4011_v22  ;;  %2451 = vmatprep.mubr.bf16.mxu1 %v4825_v55  ;;  %v4075_v21 = vld [vmem:[#allocation7 + $0x310] ss:$24 sps:$4 sm:$0xff]   ;;  %v4080_v22 = vld [vmem:[#allocation7 + $0x63c] ss:$24 sps:$4 sm:$0xff]  }
 0x161   : > { %2573 = vmatprep.mubr.bf16.mxu0 %v4821_v50  ;;  %v4027_v50 = vld [vmem:[#allocation7 + $0x190] ss:$24 sps:$4 sm:$0xff]  }
 0x162   : > { %2430 = vmatpush1.bf16.msra.mxu1 %v4006_v23  ;;  %v4083_v23 = vld [vmem:[#allocation7 + $0x344] ss:$24 sps:$4 sm:$0xff]  }
 0x163   : > { %2552 = vmatpush1.bf16.msra.mxu0 %v4009_v24  ;;  %2431 = vmatprep.subr.bf16.mxu1 %v4014_v25  ;;  %v4078_v24 = vld [vmem:[#allocation7 + $0x638] ss:$24 sps:$4 sm:$0xff]  }
 0x164   : > { %2553 = vmatprep.subr.bf16.mxu0 %v4017_v26  ;;  %v4081_v25 = vld [vmem:[#allocation7 + $0x340] ss:$24 sps:$4 sm:$0xff]   ;;  %v4086_v26 = vld [vmem:[#allocation7 + $0x66c] ss:$24 sps:$4 sm:$0xff]  }
 0x166   : > { %2432 = vmatpush1.bf16.msra.mxu1 %v4012_v27  ;;  %v4089_v27 = vld [vmem:[#allocation7 + $0x374] ss:$24 sps:$4 sm:$0xff]  }
 0x167   : > { %2554 = vmatpush1.bf16.msra.mxu0 %v4015_v28  ;;  %2433 = vmatprep.subr.bf16.mxu1 %v4020_v29  ;;  %v4084_v28 = vld [vmem:[#allocation7 + $0x668] ss:$24 sps:$4 sm:$0xff]  }
 0x168   : > { %2555 = vmatprep.subr.bf16.mxu0 %v4023_v30  ;;  %v4087_v29 = vld [vmem:[#allocation7 + $0x370] ss:$24 sps:$4 sm:$0xff]   ;;  %v4092_v30 = vld [vmem:[#allocation7 + $0x69c] ss:$24 sps:$4 sm:$0xff]  }
 0x16a   : > { %2434 = vmatpush1.bf16.msra.mxu1 %v4018_v31  ;;  %v4090_v31 = vld [vmem:[#allocation7 + $0x698] ss:$24 sps:$4 sm:$0xff]  }
 0x16b   : > { %2556 = vmatpush1.bf16.msra.mxu0 %v4021_v32  ;;  %2435 = vmatprep.subr.bf16.mxu1 %v4026_v33  ;;  %v4093_v32 = vld [vmem:[#allocation7 + $0x3a0] ss:$24 sps:$4 sm:$0xff]   ;;  %v4098_v33 = vld [vmem:[#allocation7 + $0x6cc] ss:$24 sps:$4 sm:$0xff]  }
 0x16c   : > { %2557 = vmatprep.subr.bf16.mxu0 %v4029_v35  ;;  %v4096_v35 = vld [vmem:[#allocation7 + $0x6c8] ss:$24 sps:$4 sm:$0xff]  }
 0x16e   : > { %2436 = vmatpush1.bf16.msra.mxu1 %v4024_v36  ;;  %v4099_v36 = vld [vmem:[#allocation7 + $0x3d0] ss:$24 sps:$4 sm:$0xff]  }
 0x16f   : > { %2558 = vmatpush1.bf16.msra.mxu0 %v4027_v50  ;;  %2437 = vmatprep.subr.bf16.mxu1 %v4032_v37  ;;  %v4104_v50 = vld [vmem:[#allocation7 + $0x6fc] ss:$24 sps:$4 sm:$0xff]   ;;  %v4102_v37 = vld [vmem:[#allocation7 + $0x6f8] ss:$24 sps:$4 sm:$0xff]  }
 0x170   : > { %2559 = vmatprep.subr.bf16.mxu0 %v4035_v39  ;;  %v4105_v39 = vld [vmem:[#allocation7 + $0x400] ss:$24 sps:$4 sm:$0xff]  }
 0x172   : > { %2438 = vmatpush1.bf16.msra.mxu1 %v4030_v40  ;;  %v4110_v40 = vld [vmem:[#allocation7 + $0x72c] ss:$24 sps:$4 sm:$0xff]  }
 0x173   : > { %2560 = vmatpush1.bf16.msra.mxu0 %v4033_v41  ;;  %2439 = vmatprep.subr.bf16.mxu1 %v4038_v42  ;;  %v4108_v41 = vld [vmem:[#allocation7 + $0x728] ss:$24 sps:$4 sm:$0xff]  }
 0x174   : > { %2561 = vmatprep.subr.bf16.mxu0 %v4041_v45  ;;  %v4111_v42 = vld [vmem:[#allocation7 + $0x430] ss:$24 sps:$4 sm:$0xff]   ;;  %v4116_v45 = vld [vmem:[#allocation7 + $0x75c] ss:$24 sps:$4 sm:$0xff]  }
 0x176   : > { %2440 = vmatpush1.bf16.msra.mxu1 %v4036_v46  ;;  %v4114_v46 = vld [vmem:[#allocation7 + $0x758] ss:$24 sps:$4 sm:$0xff]  }
 0x177   : > { %2562 = vmatpush1.bf16.msra.mxu0 %v4039_v47  ;;  %2441 = vmatprep.subr.bf16.mxu1 %v4044_v49  ;;  %v4117_v47 = vld [vmem:[#allocation7 + $0x460] ss:$24 sps:$4 sm:$0xff]   ;;  %v4122_v49 = vld [vmem:[#allocation7 + $0x78c] ss:$24 sps:$4 sm:$0xff]  }
 0x178   : > { %2563 = vmatprep.subr.bf16.mxu0 %v4047_v51  ;;  %v4125_v51 = vld [vmem:[#allocation7 + $0x494] ss:$24 sps:$4 sm:$0xff]  }
 0x17a   : > { %2442 = vmatpush1.bf16.msra.mxu1 %v4042_v52  ;;  %v4120_v52 = vld [vmem:[#allocation7 + $0x788] ss:$24 sps:$4 sm:$0xff]  }
 0x17b   : > { %2564 = vmatpush1.bf16.msra.mxu0 %v4045_v56  ;;  %2443 = vmatprep.subr.bf16.mxu1 %v4050_v57  ;;  %v4128_v56 = vld [vmem:[#allocation7 + $0x7bc] ss:$24 sps:$4 sm:$0xff]  }
 0x17c   : > { %2565 = vmatprep.subr.bf16.mxu0 %v4053_v58  ;;  %v4131_v57 = vld [vmem:[#allocation7 + $0x4c4] ss:$24 sps:$4 sm:$0xff]   ;;  %v4126_v58 = vld [vmem:[#allocation7 + $0x7b8] ss:$24 sps:$4 sm:$0xff]  }
 0x17e   : > { %2444 = vmatpush1.bf16.msra.mxu1 %v4048_v62  ;;  %v4129_v62 = vld [vmem:[#allocation7 + $0x4c0] ss:$24 sps:$4 sm:$0xff]  }
 0x17f   : > { %2566 = vmatpush1.bf16.msra.mxu0 %v4051_v63  ;;  %2445 = vmatprep.subr.bf16.mxu1 %v4056_v0  ;;  %v4134_v63 = vld [vmem:[#allocation7 + $0x7ec] ss:$24 sps:$4 sm:$0xff]  }
 0x180   : > { %2567 = vmatprep.subr.bf16.mxu0 %v4059_v1  ;;  %v4137_v0 = vld [vmem:[#allocation7 + $0x4f4] ss:$24 sps:$4 sm:$0xff]   ;;  %v4132_v1 = vld [vmem:[#allocation7 + $0x7e8] ss:$24 sps:$4 sm:$0xff]  }
 0x182   : > { %2446 = vmatpush1.bf16.msra.mxu1 %v4054_v2  ;;  %v4135_v2 = vld [vmem:[#allocation7 + $0x4f0] ss:$24 sps:$4 sm:$0xff]  }
 0x183   : > { %2568 = vmatpush1.bf16.msra.mxu0 %v4057_v4  ;;  %2447 = vmatprep.subr.bf16.mxu1 %v4062_v5  ;;  %v4140_v4 = vld [vmem:[#allocation7 + $0x81c] ss:$24 sps:$4 sm:$0xff]  }
 0x184   : > { %2569 = vmatprep.subr.bf16.mxu0 %v4065_v7  ;;  %v4143_v5 = vld [vmem:[#allocation7 + $0x524] ss:$24 sps:$4 sm:$0xff]   ;;  %v4138_v7 = vld [vmem:[#allocation7 + $0x818] ss:$24 sps:$4 sm:$0xff]  }
 0x186   : > { %2448 = vmatpush1.bf16.msra.mxu1 %v4060_v8  ;;  %v4141_v8 = vld [vmem:[#allocation7 + $0x520] ss:$24 sps:$4 sm:$0xff]  }
 0x187   : > { %2570 = vmatpush1.bf16.msra.mxu0 %v4063_v9  ;;  %2449 = vmatprep.subr.bf16.mxu1 %v4068_v11  ;;  %v4146_v9 = vld [vmem:[#allocation7 + $0x84c] ss:$24 sps:$4 sm:$0xff]  }
 0x188   : > { %2571 = vmatprep.subr.bf16.mxu0 %v4071_v13  ;;  %v4149_v11 = vld [vmem:[#allocation7 + $0x554] ss:$24 sps:$4 sm:$0xff]   ;;  %v4144_v13 = vld [vmem:[#allocation7 + $0x848] ss:$24 sps:$4 sm:$0xff]  }
 0x18a   : > { %2450 = vmatpush1.bf16.msra.mxu1 %v4066_v14  ;;  %v4147_v14 = vld [vmem:[#allocation7 + $0x550] ss:$24 sps:$4 sm:$0xff]  }
 0x18b   : > { %2572 = vmatpush1.bf16.msra.mxu0 %v4069_v16  ;;  %2480 = vmatprep.subr.bf16.mxu1 %v4074_v17  ;;  %v4152_v16 = vld [vmem:[#allocation7 + $0x87c] ss:$24 sps:$4 sm:$0xff]  }
 0x18c   : > { %2602 = vmatprep.subr.bf16.mxu0 %v4077_v19  ;;  %v4155_v17 = vld [vmem:[#allocation7 + $0x584] ss:$24 sps:$4 sm:$0xff]   ;;  %v4150_v19 = vld [vmem:[#allocation7 + $0x878] ss:$24 sps:$4 sm:$0xff]  }
 0x18d   : > { %2452 = vmatmul.mubr.bf16.vlgmr.msra.gmra.mrb[12].mxu1 %v4835_v15 }
 0x18e   : > { %2574 = vmatmul.mubr.bf16.vlgmr.msra.gmra.mrb[16].mxu0 %v4833_v12  ;;  %2481 = vmatpush1.bf16.msra.mxu1 %v4072_v20  ;;  %v4095_v12 = vld [vmem:[#allocation7 + $0x3a4] ss:$24 sps:$4 sm:$0xff]   ;;  %v4153_v20 = vld [vmem:[#allocation7 + $0x580] ss:$24 sps:$4 sm:$0xff]  }
 0x18f   : > { %2603 = vmatpush1.bf16.msra.mxu0 %v4075_v21  ;;  %2482 = vmatprep.subr.bf16.mxu1 %v4080_v22  ;;  %v4158_v21 = vld [vmem:[#allocation7 + $0x8ac] ss:$24 sps:$4 sm:$0xff]  }
 0x190   : > { %2604 = vmatprep.subr.bf16.mxu0 %v4083_v23  ;;  %2461 = vmatprep.mubr.bf16.mxu1 %v4846_v38  ;;  %v4161_v22 = vld [vmem:[#allocation7 + $0x5b4] ss:$24 sps:$4 sm:$0xff]   ;;  %v4156_v23 = vld [vmem:[#allocation7 + $0x8a8] ss:$24 sps:$4 sm:$0xff]  }
 0x191   : > { %2583 = vmatprep.mubr.bf16.mxu0 %v4841_v34  ;;  %v4101_v34 = vld [vmem:[#allocation7 + $0x3d4] ss:$24 sps:$4 sm:$0xff]  }
 0x192   : > { %2483 = vmatpush1.bf16.msra.mxu1 %v4078_v24  ;;  %v4159_v24 = vld [vmem:[#allocation7 + $0x5b0] ss:$24 sps:$4 sm:$0xff]  }
 0x193   : > { %2605 = vmatpush1.bf16.msra.mxu0 %v4081_v25  ;;  %2484 = vmatprep.subr.bf16.mxu1 %v4086_v26  ;;  %v4164_v25 = vld [vmem:[#allocation7 + $0x8dc] ss:$24 sps:$4 sm:$0xff]  }
 0x194   : > { %2606 = vmatprep.subr.bf16.mxu0 %v4089_v27  ;;  %v4167_v26 = vld [vmem:[#allocation7 + $0x5e4] ss:$24 sps:$4 sm:$0xff]   ;;  %v4162_v27 = vld [vmem:[#allocation7 + $0x8d8] ss:$24 sps:$4 sm:$0xff]  }
 0x195   : > { %2462 = vmatmul.mubr.bf16.gmra.mrb[16].mxu1 %v4853_v44 }
 0x196   : > { %2584 = vmatmul.mubr.bf16.gmra.mrb[20].mxu0 %v4851_v43  ;;  %2485 = vmatpush1.bf16.msra.mxu1 %v4084_v28  ;;  %v4107_v43 = vld [vmem:[#allocation7 + $0x404] ss:$24 sps:$4 sm:$0xff]   ;;  %v4165_v28 = vld [vmem:[#allocation7 + $0x5e0] ss:$24 sps:$4 sm:$0xff]  }
 0x197   : > { %2607 = vmatpush1.bf16.msra.mxu0 %v4087_v29  ;;  %2486 = vmatprep.subr.bf16.mxu1 %v4092_v30  ;;  %v4170_v29 = vld [vmem:[#allocation7 + $0x614] ss:$24 sps:$4 sm:$0xff]   ;;  %v4168_v30 = vld [vmem:[#allocation7 + $0x610] ss:$24 sps:$4 sm:$0xff]  }
 0x198   : > { %2608 = vmatprep.subr.bf16.mxu0 %v4095_v12  ;;  %2471 = vmatprep.mubr.bf16.mxu1 %v4863_v54  ;;  %v4173_v12 = vld [vmem:[#allocation7 + $0x644] ss:$24 sps:$4 sm:$0xff]  }
 0x199   : > { %2593 = vmatprep.mubr.bf16.mxu0 %v4861_v53  ;;  %v4113_v53 = vld [vmem:[#allocation7 + $0x434] ss:$24 sps:$4 sm:$0xff]  }
 0x19a   : > { %2487 = vmatpush1.bf16.msra.mxu1 %v4090_v31  ;;  %v4171_v31 = vld [vmem:[#allocation7 + $0x640] ss:$24 sps:$4 sm:$0xff]  }
 0x19b   : > { %2609 = vmatpush1.bf16.msra.mxu0 %v4093_v32  ;;  %2488 = vmatprep.subr.bf16.mxu1 %v4098_v33  ;;  %v4176_v32 = vld [vmem:[#allocation7 + $0x674] ss:$24 sps:$4 sm:$0xff]   ;;  %v4174_v33 = vld [vmem:[#allocation7 + $0x670] ss:$24 sps:$4 sm:$0xff]  }
 0x19c   : > { %2610 = vmatprep.subr.bf16.mxu0 %v4101_v34  ;;  %v4179_v34 = vld [vmem:[#allocation7 + $0x6a4] ss:$24 sps:$4 sm:$0xff]  }
 0x19d   : > { %2472 = vmatmul.mubr.bf16.gmra.mrb[24].mxu1 %v4869_v61 }
 0x19e   : > { %2594 = vmatmul.mubr.bf16.gmra.mrb[24].mxu0 %v4867_v60  ;;  %2489 = vmatpush1.bf16.msra.mxu1 %v4096_v35  ;;  %v4119_v60 = vld [vmem:[#allocation7 + $0x464] ss:$24 sps:$4 sm:$0xff]   ;;  %v4182_v35 = vld [vmem:[#allocation7 + $0x6d4] ss:$24 sps:$4 sm:$0xff]  }
 0x19f   : > { %2611 = vmatpush1.bf16.msra.mxu0 %v4099_v36  ;;  %2490 = vmatprep.subr.bf16.mxu1 %v4104_v50  ;;  %v4185_v36 = vld [vmem:[#allocation7 + $0x704] ss:$24 sps:$4 sm:$0xff]   ;;  %v4188_v50 = vld [vmem:[#allocation7 + $0x734] ss:$24 sps:$4 sm:$0xff]  }
 0x1a0   : > { %2612 = vmatprep.subr.bf16.mxu0 %v4107_v43  ;;  %2512 = vmatprep.mubr.bf16.mxu1 %v4877_v6 }
 0x1a1   : > { %2634 = vmatprep.mubr.bf16.mxu0 %v4825_v55  ;;  %v4123_v55 = vld [vmem:[#allocation7 + $0x490] ss:$24 sps:$4 sm:$0xff]  }
 0x1a2   : > { %2491 = vmatpush1.bf16.msra.mxu1 %v4102_v37 }
 0x1a3   : > { %2613 = vmatpush1.bf16.msra.mxu0 %v4105_v39  ;;  %2492 = vmatprep.subr.bf16.mxu1 %v4110_v40  ;;  %v4186_v39 = vld [vmem:[#allocation7 + $0x730] ss:$24 sps:$4 sm:$0xff]   ;;  %v4191_v40 = vld [vmem:[#allocation7 + $0x764] ss:$24 sps:$4 sm:$0xff]  }
 0x1a4   : > { %2614 = vmatprep.subr.bf16.mxu0 %v4113_v53  ;;  %v4189_v53 = vld [vmem:[#allocation7 + $0x760] ss:$24 sps:$4 sm:$0xff]  }
 0x1a6   : > { %2493 = vmatpush1.bf16.msra.mxu1 %v4108_v41  ;;  %v705_v41 = vlaneseq }
 0x1a7   : > { %2615 = vmatpush1.bf16.msra.mxu0 %v4111_v42  ;;  %2494 = vmatprep.subr.bf16.mxu1 %v4116_v45  ;;  %v4197_v42 = vld [vmem:[#allocation7 + $0x7c4] ss:$24 sps:$4 sm:$0xff]   ;;  %v4195_v45 = vld [vmem:[#allocation7 + $0x7c0] ss:$24 sps:$4 sm:$0xff]  }
 0x1a8   : > { %2616 = vmatprep.subr.bf16.mxu0 %v4119_v60  ;;  %v4943_v60 = vshrl.u32 %v705_v41, 7 }
 0x1aa   : > { %2495 = vmatpush1.bf16.msra.mxu1 %v4114_v46  ;;  %v4200_v46 = vld [vmem:[#allocation7 + $0x7f4] ss:$24 sps:$4 sm:$0xff]  }
 0x1ab   : > { %2617 = vmatpush1.bf16.msra.mxu0 %v4117_v47  ;;  %2496 = vmatprep.subr.bf16.mxu1 %v4122_v49 }
 0x1ac   : > { %2618 = vmatprep.subr.bf16.mxu0 %v4125_v51  ;;  %v4198_v51 = vld [vmem:[#allocation7 + $0x7f0] ss:$24 sps:$4 sm:$0xff]  }
 0x1ae   : > { %2497 = vmatpush1.bf16.msra.mxu1 %v4120_v52 }
 0x1af   : > { %2619 = vmatpush1.bf16.msra.mxu0 %v4123_v55  ;;  %2498 = vmatprep.subr.bf16.mxu1 %v4128_v56  ;;  %v4952_v55 = vsub.s32 0, %v4943_v60  ;;  %v4203_v56 = vld [vmem:[#allocation7 + $0x824] ss:$24 sps:$4 sm:$0xff]  }
 0x1b0   : > { %2620 = vmatprep.subr.bf16.mxu0 %v4131_v57 }
 0x1b2   : > { %2499 = vmatpush1.bf16.msra.mxu1 %v4126_v58  ;;  %v4956_v58 = vld [vmem:[#allocation8] sm:$0x3f] }
 0x1b3   : > { %2621 = vmatpush1.bf16.msra.mxu0 %v4129_v62  ;;  %2500 = vmatprep.subr.bf16.mxu1 %v4134_v63  ;;  %v4959_v62 = vsub.s32 1, %v4943_v60  ;;  %v4201_v63 = vld [vmem:[#allocation7 + $0x820] ss:$24 sps:$4 sm:$0xff]  }
 0x1b4   : > { %2622 = vmatprep.subr.bf16.mxu0 %v4137_v0  ;;  %v708_v0 = vrot.slane %v4956_v58, %v4952_v55 }
 0x1b6   : > { %2501 = vmatpush1.bf16.msra.mxu1 %v4132_v1  ;;  %v4206_v1 = vld [vmem:[#allocation7 + $0x854] ss:$24 sps:$4 sm:$0xff]  }
 0x1b7   : > { %2623 = vmatpush1.bf16.msra.mxu0 %v4135_v2  ;;  %2502 = vmatprep.subr.bf16.mxu1 %v4140_v4  ;;  %v712_v2 = vrot.slane %v4956_v58, %v4959_v62 }
 0x1b8   : > { %2624 = vmatprep.subr.bf16.mxu0 %v4143_v5 }
 0x1ba   : > { %2503 = vmatpush1.bf16.msra.mxu1 %v4138_v7 }
 0x1bb   : > { %2625 = vmatpush1.bf16.msra.mxu0 %v4141_v8  ;;  %2504 = vmatprep.subr.bf16.mxu1 %v4146_v9 }
 0x1bc   : > { %2626 = vmatprep.subr.bf16.mxu0 %v4149_v11  ;;  %v4204_v11 = vld [vmem:[#allocation7 + $0x850] ss:$24 sps:$4 sm:$0xff]  }
 0x1be   : > { %2505 = vmatpush1.bf16.msra.mxu1 %v4144_v13 }
 0x1bf   : > { %2627 = vmatpush1.bf16.msra.mxu0 %v4147_v14  ;;  %2506 = vmatprep.subr.bf16.mxu1 %v4152_v16 }
 0x1c0   : > { %2628 = vmatprep.subr.bf16.mxu0 %v4155_v17  ;;  %v4209_v17 = vld [vmem:[#allocation7 + $0x884] ss:$24 sps:$4 sm:$0xff]  }
 0x1c2   : > { %2507 = vmatpush1.bf16.msra.mxu1 %v4150_v19 }
 0x1c3   : > { %2629 = vmatpush1.bf16.msra.mxu0 %v4153_v20  ;;  %2508 = vmatprep.subr.bf16.mxu1 %v4158_v21 }
 0x1c4   : > { %2630 = vmatprep.subr.bf16.mxu0 %v4161_v22 }
 0x1c6   : > { %2509 = vmatpush1.bf16.msra.mxu1 %v4156_v23  ;;  %v4207_v23 = vld [vmem:[#allocation7 + $0x880] ss:$24 sps:$4 sm:$0xff]  }
 0x1c7   : > { %2631 = vmatpush1.bf16.msra.mxu0 %v4159_v24  ;;  %2510 = vmatprep.subr.bf16.mxu1 %v4164_v25  ;;  %v4212_v24 = vld [vmem:[#allocation7 + $0x8b4] ss:$24 sps:$4 sm:$0xff]   ;;  %v4210_v25 = vld [vmem:[#allocation7 + $0x8b0] ss:$24 sps:$4 sm:$0xff]  }
 0x1c8   : > { %2632 = vmatprep.subr.bf16.mxu0 %v4167_v26  ;;  %v4215_v26 = vld [vmem:[#allocation7 + $0x8e4] ss:$24 sps:$4 sm:$0xff]  }
 0x1ca   : > { %2511 = vmatpush1.bf16.msra.mxu1 %v4162_v27  ;;  %v4213_v27 = vld [vmem:[#allocation7 + $0x8e0] ss:$24 sps:$4 sm:$0xff]  }
 0x1cb   : > { %2633 = vmatpush1.bf16.msra.mxu0 %v4165_v28  ;;  %3573 = vmatprep.subr.bf16.mxu1 %v4170_v29 }
 0x1cc   : > { %2663 = vmatprep.subr.bf16.mxu0 %v4170_v29 }
 0x1cd   : > { %2513 = vmatmul.mubr.bf16.vlgmr.msra.gmra.mrb[12].mxu1 %v4884_v48 }
 0x1ce   : > { %2635 = vmatmul.mubr.bf16.vlgmr.msra.gmra.mrb[16].mxu0 %v4835_v15  ;;  %3589 = vmatpush1.bf16.msra.mxu1 %v4168_v30  ;;  %v4177_v15 = vld [vmem:[#allocation7 + $0x6a0] ss:$24 sps:$4 sm:$0xff]  }
 0x1cf   : > { %2664 = vmatpush1.bf16.msra.mxu0 %v4168_v30  ;;  %3574 = vmatprep.subr.bf16.mxu1 %v4173_v12 }
 0x1d0   : > { %2665 = vmatprep.subr.bf16.mxu0 %v4173_v12  ;;  %2522 = vmatprep.mubr.bf16.mxu1 %v4887_v59 }
 0x1d1   : > { %2644 = vmatprep.mubr.bf16.mxu0 %v4846_v38  ;;  %v4180_v38 = vld [vmem:[#allocation7 + $0x6d0] ss:$24 sps:$4 sm:$0xff]  }
 0x1d2   : > { %3590 = vmatpush1.bf16.msra.mxu1 %v4171_v31 }
 0x1d3   : > { %2666 = vmatpush1.bf16.msra.mxu0 %v4171_v31  ;;  %3575 = vmatprep.subr.bf16.mxu1 %v4176_v32 }
 0x1d4   : > { %2667 = vmatprep.subr.bf16.mxu0 %v4176_v32 }
 0x1d5   : > { %2523 = vmatmul.mubr.bf16.gmra.mrb[16].mxu1 %v4895_v3 }
 0x1d6   : > { %2645 = vmatmul.mubr.bf16.gmra.mrb[20].mxu0 %v4853_v44  ;;  %3591 = vmatpush1.bf16.msra.mxu1 %v4174_v33  ;;  %v4183_v44 = vld [vmem:[#allocation7 + $0x700] ss:$24 sps:$4 sm:$0xff]  }
 0x1d7   : > { %2668 = vmatpush1.bf16.msra.mxu0 %v4174_v33  ;;  %3576 = vmatprep.subr.bf16.mxu1 %v4179_v34 }
 0x1d8   : > { %2669 = vmatprep.subr.bf16.mxu0 %v4179_v34  ;;  %2532 = vmatprep.mubr.bf16.mxu1 %v4898_v10 }
 0x1d9   : > { %2654 = vmatprep.mubr.bf16.mxu0 %v4863_v54 }
 0x1da   : > { %3592 = vmatpush1.bf16.msra.mxu1 %v4177_v15 }
 0x1db   : > { %2670 = vmatpush1.bf16.msra.mxu0 %v4177_v15  ;;  %3577 = vmatprep.subr.bf16.mxu1 %v4182_v35 }
 0x1dc   : > { %2671 = vmatprep.subr.bf16.mxu0 %v4182_v35 }
 0x1dd   : > { %2533 = vmatmul.mubr.bf16.gmra.mrb[28].mxu1 %v4905_v18 }
 0x1de   : > { %2655 = vmatmul.mubr.bf16.gmra.mrb[28].mxu0 %v4869_v61  ;;  %3593 = vmatpush1.bf16.msra.mxu1 %v4180_v38 }
 0x1df   : > { %2672 = vmatpush1.bf16.msra.mxu0 %v4180_v38  ;;  %3578 = vmatprep.subr.bf16.mxu1 %v4185_v36 }
 0x1e0   : > { %2673 = vmatprep.subr.bf16.mxu0 %v4185_v36  ;;  %v4933_v43 = vpop.f32.mrb[0].mxu1  ;;  %2695 = vmatprep.mubr.bf16.mxu0 %v4877_v6  ;;  %v4194_v6 = vld [vmem:[#allocation7 + $0x794] ss:$24 sps:$4 sm:$0xff]  }
 0x1e1   : > { %2705 = vmatprep.mubr.bf16.mxu1 %v4887_v59  ;;  %v4937_v54 = vpop.f32.mrb[1].mxu1  ;;  %v4192_v59 = vld [vmem:[#allocation7 + $0x790] ss:$24 sps:$4 sm:$0xff]   ;;  %v2210_v28 = vadd.f32 %v4933_v43, %v708_v0 }
 0x1e2   : > { %v4939_v37 = vpop.f32.mrb[2].mxu1  ;;  %3594 = vmatpush1.bf16.msra.mxu1 %v4183_v44  ;;  %v2212_v29 = vadd.f32 %v4937_v54, %v712_v2 }
 0x1e3   : > { %2674 = vmatpush1.bf16.msra.mxu0 %v4183_v44  ;;  %v4941_v61 = vpop.f32.mrb[3].mxu1  ;;  %3579 = vmatprep.subr.bf16.mxu1 %v4188_v50  ;;  %v2214_v12 = vadd.f32 %v4939_v37, %v708_v0 }
 0x1e4   : > { %2675 = vmatprep.subr.bf16.mxu0 %v4188_v50  ;;  %v2216_v33 = vadd.f32 %v4941_v61, %v712_v2 }
 0x1e6   : > { %3595 = vmatpush1.bf16.msra.mxu1 %v4186_v39 }
 0x1e7   : > { %2676 = vmatpush1.bf16.msra.mxu0 %v4186_v39  ;;  %3580 = vmatprep.subr.bf16.mxu1 %v4191_v40 }
 0x1e8   : > { %2677 = vmatprep.subr.bf16.mxu0 %v4191_v40  ;;  %v4945_v47 = vpop.f32.mrb[4].mxu1 }
 0x1e9   : > { %v4947_v49 = vpop.f32.mrb[5].mxu1 }
 0x1ea   : > { %3596 = vmatpush1.bf16.msra.mxu1 %v4189_v53  ;;  %v4949_v52 = vpop.f32.mrb[6].mxu1  ;;  %v2222_v35 = vadd.f32 %v4947_v49, %v712_v2 }
 0x1eb   : > { %2678 = vmatpush1.bf16.msra.mxu0 %v4189_v53  ;;  %3581 = vmatprep.subr.bf16.mxu1 %v4194_v6  ;;  %v4954_v57 = vpop.f32.mrb[7].mxu1  ;;  %v2224_v36 = vadd.f32 %v4949_v52, %v708_v0  ;;  %v4998_v52 = vsub.s32 2, %v4943_v60 }
 0x1ec   : > { %2679 = vmatprep.subr.bf16.mxu0 %v4194_v6  ;;  %v2226_v43 = vadd.f32 %v4954_v57, %v712_v2 }
 0x1ed   : > { %v716_v57 = vrot.slane %v4956_v58, %v4998_v52 }
 0x1ee   : > { %3597 = vmatpush1.bf16.msra.mxu1 %v4192_v59 }
 0x1ef   : > { %2680 = vmatpush1.bf16.msra.mxu0 %v4192_v59  ;;  %3582 = vmatprep.subr.bf16.mxu1 %v4197_v42 }
 0x1f0   : > { %2681 = vmatprep.subr.bf16.mxu0 %v4197_v42  ;;  %v2229_v4 = vpop.f32.mrb[8].mxu1 }
 0x1f1   : > { %v2290_v5 = vpop.f32.mrb[8].mxu0  ;;  %v2230_v7 = vadd.f32 %v2229_v4, %v708_v0  ;;  %v2231_v8 = vpop.f32.mrb[9].mxu1 }
 0x1f2   : > { %3598 = vmatpush1.bf16.msra.mxu1 %v4195_v45  ;;  %v2292_v9 = vpop.f32.mrb[9].mxu0  ;;  %v2232_v13 = vadd.f32 %v2231_v8, %v712_v2  ;;  %v2233_v14 = vpop.f32.mrb[10].mxu1 }
 0x1f3   : > { %2682 = vmatpush1.bf16.msra.mxu0 %v4195_v45  ;;  %3583 = vmatprep.subr.bf16.mxu1 %v4200_v46  ;;  %v2294_v16 = vpop.f32.mrb[10].mxu0  ;;  %v2291_v19 = vadd.f32 %v2290_v5, %v2230_v7  ;;  %v2234_v20 = vpop.f32.mrb[11].mxu1 }
 0x1f4   : > { %2683 = vmatprep.subr.bf16.mxu0 %v4200_v46  ;;  %v2295_v21 = vpop.f32.mrb[11].mxu0  ;;  %v2293_v22 = vadd.f32 %v2292_v9, %v2232_v13 }
 0x1f6   : > { %3599 = vmatpush1.bf16.msra.mxu1 %v4198_v51 }
 0x1f7   : > { %2684 = vmatpush1.bf16.msra.mxu0 %v4198_v51  ;;  %3584 = vmatprep.subr.bf16.mxu1 %v4203_v56 }
 0x1f8   : > { %2685 = vmatprep.subr.bf16.mxu0 %v4203_v56  ;;  %v5001_v56 = vsub.s32 3, %v4943_v60 }
 0x1fa   : > { %3600 = vmatpush1.bf16.msra.mxu1 %v4201_v63 }
 0x1fb   : > { %2686 = vmatpush1.bf16.msra.mxu0 %v4201_v63  ;;  %3585 = vmatprep.subr.bf16.mxu1 %v4206_v1  ;;  %v5007_v63 = vrot.slane %v4956_v58, %v5001_v56 }
 0x1fc   : > { %2687 = vmatprep.subr.bf16.mxu0 %v4206_v1 }
 0x1fe   : > { %3601 = vmatpush1.bf16.msra.mxu1 %v4204_v11 }
 0x1ff   : > { %2688 = vmatpush1.bf16.msra.mxu0 %v4204_v11  ;;  %3586 = vmatprep.subr.bf16.mxu1 %v4209_v17 }
 0x200   : > { %2689 = vmatprep.subr.bf16.mxu0 %v4209_v17 }
 0x202   : > { %3602 = vmatpush1.bf16.msra.mxu1 %v4207_v23 }
 0x203   : > { %2690 = vmatpush1.bf16.msra.mxu0 %v4207_v23  ;;  %3587 = vmatprep.subr.bf16.mxu1 %v4212_v24  ;;  %v5014_v23 = vsub.s32 5, %v4943_v60 }
 0x204   : > { %2691 = vmatprep.subr.bf16.mxu0 %v4212_v24 }
 0x206   : > { %3603 = vmatpush1.bf16.msra.mxu1 %v4210_v25 }
 0x207   : > { %2692 = vmatpush1.bf16.msra.mxu0 %v4210_v25  ;;  %3588 = vmatprep.subr.bf16.mxu1 %v4215_v26 }
 0x208   : > { %2693 = vmatprep.subr.bf16.mxu0 %v4215_v26 }
 0x20a   : > { %3604 = vmatpush1.bf16.msra.mxu1 %v4213_v27 }
 0x20b   : > { %2694 = vmatpush1.bf16.msra.mxu0 %v4213_v27 }
 0x20d   : > { %2706 = vmatmul.mubr.bf16.vlgmr.msra.gmra.mrb[32].mxu1 %v4895_v3 }
 0x20e   : > { %2696 = vmatmul.mubr.bf16.vlgmr.msra.gmra.mrb[16].mxu0 %v4884_v48  ;;  %2715 = vmatprep.mubr.bf16.mxu1 %v4898_v10 }
 0x215   : > { %2716 = vmatmul.mubr.bf16.gmra.mrb[36].mxu1 %v4905_v18  ;;  %v2220_v18 = vadd.f32 %v4945_v47, %v708_v0 }
 0x221   : > { %v2331_v30 = vpop.f32.mrb[0].mxu0 }
 0x222   : > { %v4972_v31 = vadd.f32 %v2331_v30, %v2210_v28  ;;  %v2333_v32 = vpop.f32.mrb[1].mxu0 }
 0x223   : > { %v4975_v34 = vadd.f32 %v2333_v32, %v2212_v29  ;;  %v2335_v48 = vpop.f32.mrb[2].mxu0 }
 0x224   : > { %v4977_v3 = vadd.f32 %v2335_v48, %v2214_v12  ;;  %v2337_v10 = vpop.f32.mrb[3].mxu0 }
 0x225   : > { %v4979_v15 = vadd.f32 %v2337_v10, %v2216_v33 }
 0x229   : > { %v2341_v38 = vpop.f32.mrb[4].mxu0 }
 0x22a   : > { %v4984_v44 = vadd.f32 %v2341_v38, %v2220_v18  ;;  %v2343_v50 = vpop.f32.mrb[5].mxu0 }
 0x22b   : > { %v4987_v54 = vadd.f32 %v2343_v50, %v2222_v35  ;;  %v2345_v37 = vpop.f32.mrb[6].mxu0 }
 0x22c   : > { %v4989_v39 = vadd.f32 %v2345_v37, %v2224_v36  ;;  %v2347_v61 = vpop.f32.mrb[7].mxu0 }
 0x22d   : > { %v4991_v40 = vadd.f32 %v2347_v61, %v2226_v43 }
 0x230   : > { %v2412_v6 = vpop.f32.mrb[20].mxu1 }
 0x231   : > { %v2351_v53 = vpop.f32.mrb[12].mxu0  ;;  %v2414_v42 = vpop.f32.mrb[21].mxu1  ;;  %v2413_v0 = vadd.f32 %v2412_v6, %v716_v57 }
 0x232   : > { %v4993_v59 = vadd.f32 %v2351_v53, %v2291_v19  ;;  %v2353_v41 = vpop.f32.mrb[13].mxu0  ;;  %v2416_v47 = vpop.f32.mrb[22].mxu1  ;;  %v2415_v1 = vadd.f32 %v2414_v42, %v5007_v63  ;;  %v2725_v42 = vld [vmem:[%s4801_s29 + $0x8] sm:$0xff] }
 0x233   : > { %v4995_v45 = vadd.f32 %v2353_v41, %v2293_v22  ;;  %v2355_v46 = vpop.f32.mrb[14].mxu0  ;;  %v2417_v51 = vpop.f32.mrb[23].mxu1  ;;  %v5011_v22 = vsub.s32 4, %v4943_v60  ;;  %v5030_v60 = vrot.slane %v4956_v58, %v5014_v23  ;;  %v2724_v41 = vld [vmem:[%s4801_s29] sm:$0xff]  ;;  %v2731_v47 = vld [vmem:[%s4801_s29 + $0x38] sm:$0xff] }
 0x234   : > { %v2356_v49 = vpop.f32.mrb[15].mxu0  ;;  %v2730_v46 = vld [vmem:[%s4801_s29 + $0x30] sm:$0xff]  ;;  %v2737_v51 = vld [vmem:[%s4801_s29 + $0x68] sm:$0xff] }
 0x235   : > { %v5024_v30 = vrot.slane %v4956_v58, %v5011_v22  ;;  %v2736_v49 = vld [vmem:[%s4801_s29 + $0x60] sm:$0xff] }
 0x270   : > { %v2473_v2 = vpop.f32.mrb[24].mxu1 }
 0x271   : > { %v2595_v4 = vpop.f32.mrb[24].mxu0  ;;  %v2474_v5 = vadd.f32 %v2473_v2, %v2413_v0  ;;  %v2475_v7 = vpop.f32.mrb[25].mxu1  ;;  %v2742_v0 = vld [vmem:[%s4801_s29 + $0x90] sm:$0xff] }
 0x272   : > { %v2597_v8 = vpop.f32.mrb[25].mxu0  ;;  %v2476_v9 = vadd.f32 %v2475_v7, %v2415_v1  ;;  %v2477_v11 = vpop.f32.mrb[26].mxu1  ;;  %v2596_v33 = vadd.f32 %v2595_v4, %v5024_v30  ;;  %v2743_v1 = vld [vmem:[%s4801_s29 + $0x98] sm:$0xff]  ;;  %v2726_v7 = vld [vmem:[%s4801_s29 + $0x10] sm:$0xff] }
 0x273   : > { %v2599_v13 = vpop.f32.mrb[26].mxu0  ;;  %v2478_v14 = vpop.f32.mrb[27].mxu1  ;;  %v2598_v48 = vadd.f32 %v2597_v8, %v5030_v60  ;;  %v2732_v8 = vld [vmem:[%s4801_s29 + $0x40] sm:$0xff]  ;;  %v5056_v11 = vadd.f32 %v4975_v34, %v2725_v42  ;;  %v5072_v34 = vadd.f32 %v4989_v39, %v2742_v0  ;;  %v2750_v0 = vld [vmem:[%s4801_s29 + $0xd0] sm:$0xff] }
 0x274   : > { %v2600_v16 = vpop.f32.mrb[27].mxu0  ;;  %v5059_v13 = vadd.f32 %v4977_v3, %v2730_v46  ;;  %v5062_v14 = vadd.f32 %v4979_v15, %v2731_v47  ;;  %v2744_v3 = vld [vmem:[%s4801_s29 + $0xa0] sm:$0xff] }
 0x275   : > { %v2738_v16 = vld [vmem:[%s4801_s29 + $0x70] sm:$0xff] }
 0x2a0   : > { %v2514_v17 = vpop.f32.mrb[12].mxu1 }
 0x2a1   : > { %v2516_v19 = vpop.f32.mrb[13].mxu1  ;;  %v3621_v2 = vadd.f32 %v2514_v17, %v716_v57 }
 0x2a2   : > { %v2518_v20 = vpop.f32.mrb[14].mxu1 }
 0x2a3   : > { %v2520_v21 = vpop.f32.mrb[15].mxu1  ;;  %v3623_v4 = vadd.f32 %v2518_v20, %v716_v57  ;;  %v5066_v20 = vadd.f32 %v4984_v44, %v2736_v49  ;;  %v5080_v15 = vadd.f32 %v3621_v2, %v2726_v7 }
 0x2a5   : > { %v5083_v44 = vadd.f32 %v3623_v4, %v2732_v8  ;;  %v2728_v8 = vld [vmem:[%s4801_s29 + $0x20] sm:$0xff] }
 0x2a8   : > { %v2524_v24 = vpop.f32.mrb[16].mxu1 }
 0x2a9   : > { %v5016_v25 = vpop.f32.mrb[20].mxu0  ;;  %v2526_v26 = vpop.f32.mrb[17].mxu1 }
 0x2aa   : > { %v5018_v27 = vpop.f32.mrb[21].mxu0  ;;  %v2528_v28 = vpop.f32.mrb[18].mxu1  ;;  %v3626_v39 = vadd.f32 %v2526_v26, %v5007_v63 }
 0x2ab   : > { %v5020_v29 = vpop.f32.mrb[22].mxu0  ;;  %v2530_v12 = vpop.f32.mrb[19].mxu1  ;;  %v3627_v17 = vadd.f32 %v2528_v28, %v716_v57  ;;  %v2727_v28 = vld [vmem:[%s4801_s29 + $0x18] sm:$0xff]  ;;  %v3635_v2 = vadd.f32 %v5018_v27, %v5030_v60 }
 0x2ac   : > { %v5026_v32 = vpop.f32.mrb[23].mxu0  ;;  %v3637_v4 = vadd.f32 %v5020_v29, %v5024_v30 }
 0x2b0   : > { %v2534_v10 = vpop.f32.mrb[28].mxu1 }
 0x2b1   : > { %v2656_v18 = vpop.f32.mrb[28].mxu0  ;;  %v5034_v35 = vadd.f32 %v2534_v10, %v2474_v5  ;;  %v2536_v36 = vpop.f32.mrb[29].mxu1  ;;  %v5051_v5 = vadd.f32 %v4972_v31, %v2724_v41  ;;  %v5069_v31 = vadd.f32 %v4987_v54, %v2737_v51  ;;  %v3624_v54 = vadd.f32 %v2520_v21, %v5007_v63  ;;  %v2733_v10 = vld [vmem:[%s4801_s29 + $0x48] sm:$0xff] }
 0x2b2   : > { %v5036_v38 = vadd.f32 %v2656_v18, %v2596_v33  ;;  %v2658_v58 = vpop.f32.mrb[29].mxu0  ;;  %v5038_v50 = vadd.f32 %v2536_v36, %v2476_v9  ;;  %v2538_v37 = vpop.f32.mrb[30].mxu1  ;;  %v3625_v9 = vadd.f32 %v2524_v24, %v716_v57  ;;  %v5075_v24 = vadd.f32 %v4991_v40, %v2743_v1  ;;  %v2748_v33 = vld [vmem:[%s4801_s29 + $0xc0] sm:$0xff] }
 0x2b3   : > { %v5040_v43 = vadd.f32 %v2658_v58, %v2598_v48  ;;  %v2660_v61 = vpop.f32.mrb[30].mxu0  ;;  %v2539_v53 = vpop.f32.mrb[31].mxu1  ;;  %v2749_v48 = vld [vmem:[%s4801_s29 + $0xc8] sm:$0xff]  ;;  %v3622_v57 = vadd.f32 %v2516_v19, %v5007_v63  ;;  %v2784_v40 = vadd.f32 %v5056_v11, %v5051_v5  ;;  %v2791_v36 = vadd.f32 %v5062_v14, %v5059_v13  ;;  %v2739_v58 = vld [vmem:[%s4801_s29 + $0x78] sm:$0xff] }
 0x2b4   : > { %v2661_v6 = vpop.f32.mrb[31].mxu0  ;;  %v5088_v18 = vadd.f32 %v3625_v9, %v2738_v16  ;;  %v5096_v37 = vadd.f32 %v3627_v17, %v2744_v3  ;;  %v3628_v19 = vadd.f32 %v2530_v12, %v5007_v63  ;;  %v2798_v21 = vadd.f32 %v5069_v31, %v5066_v20  ;;  %v2740_v16 = vld [vmem:[%s4801_s29 + $0x80] sm:$0xff] }
 0x2b5   : > { %v2805_v61 = vadd.f32 %v5075_v24, %v5072_v34  ;;  %v5104_v26 = vadd.f32 %v2748_v33, %v4993_v59  ;;  %v5107_v53 = vadd.f32 %v2749_v48, %v4995_v45  ;;  %v2745_v6 = vld [vmem:[%s4801_s29 + $0xa8] sm:$0xff]  ;;  %v2785_v41 = vadd.f32 %v2784_v40, %v5080_v15 }
 0x2b6   : > { %v5111_v42 = vadd.f32 %v3622_v57, %v2727_v28  ;;  %v2792_v63 = vadd.f32 %v2791_v36, %v5083_v44  ;;  %v5114_v12 = vadd.f32 %v3624_v54, %v2733_v10  ;;  %v2799_v46 = vadd.f32 %v2798_v21, %v5088_v18  ;;  %v2741_v57 = vld [vmem:[%s4801_s29 + $0x88] sm:$0xff]  ;;  %v2734_v36 = vld [vmem:[%s4801_s29 + $0x50] sm:$0xff]  ;;  %v2751_v21 = vld [vmem:[%s4801_s29 + $0xd8] sm:$0xff] }
 0x2b7   : > { %v5117_v47 = vadd.f32 %v3626_v39, %v2739_v58  ;;  %v2806_v59 = vadd.f32 %v2805_v61, %v5096_v37  ;;  %v5120_v49 = vadd.f32 %v3628_v19, %v2745_v6  ;;  %v2812_v45 = vadd.f32 %v5107_v53, %v5104_v26  ;;  %v2729_v54 = vld [vmem:[%s4801_s29 + $0x28] sm:$0xff]  ;;  %v2746_v19 = vld [vmem:[%s4801_s29 + $0xb0] sm:$0xff] }
 0x2b8   : > { %v3633_v51 = vadd.f32 %v5016_v25, %v5024_v30  ;;  %v2793_v1 = vadd.f32 %v2792_v63, %v5114_v12  ;;  %v2786_v17 = vadd.f32 %v2785_v41, %v5111_v42  ;;  %v3639_v25 = vadd.f32 %v5026_v32, %v5030_v60 }
 0x2b9   : > { %v2800_v29 = vadd.f32 %v2799_v46, %v5117_v47  ;;  %v2807_v28 = vadd.f32 %v2806_v59, %v5120_v49  ;;  %v5143_v10 = vadd.f32 %v2750_v0, %v5034_v35  ;;  %v2735_v59 = vld [vmem:[%s4801_s29 + $0x58] sm:$0xff] }
 0x2e0   : > { %v2707_v9 = vpop.f32.mrb[32].mxu1 }
 0x2e1   : > { %v2697_v7 = vpop.f32.mrb[16].mxu0  ;;  %v3634_v33 = vadd.f32 %v3633_v51, %v2707_v9  ;;  %v2709_v27 = vpop.f32.mrb[33].mxu1 }
 0x2e2   : > { %v3629_v3 = vadd.f32 %v2697_v7, %v5024_v30  ;;  %v2699_v48 = vpop.f32.mrb[17].mxu0  ;;  %v3636_v32 = vadd.f32 %v3635_v2, %v2709_v27  ;;  %v2711_v58 = vpop.f32.mrb[34].mxu1  ;;  %v2747_v7 = vld [vmem:[%s4801_s29 + $0xb8] sm:$0xff] }
 0x2e3   : > { %v3630_v39 = vadd.f32 %v2699_v48, %v5030_v60  ;;  %v2701_v40 = vpop.f32.mrb[18].mxu0  ;;  %v5149_v6 = vadd.f32 %v3634_v33, %v2740_v16  ;;  %v3638_v63 = vadd.f32 %v3637_v4, %v2711_v58  ;;  %v2713_v51 = vpop.f32.mrb[35].mxu1  ;;  %v2813_v4 = vadd.f32 %v2812_v45, %v5143_v10  ;;  %v2753_v45 = vld [vmem:[%s4801_s29 + $0xe8] sm:$0xff] }
 0x2e4   : > { %v2758_v61 = vadd.f32 %v3629_v3, %v2728_v8  ;;  %v3631_v41 = vadd.f32 %v2701_v40, %v5024_v30  ;;  %v2703_v46 = vpop.f32.mrb[19].mxu0  ;;  %v3640_v0 = vadd.f32 %v3639_v25, %v2713_v51  ;;  %v5155_v2 = vadd.f32 %v3636_v32, %v2741_v57  ;;  %v2752_v32 = vld [vmem:[%s4801_s29 + $0xe0] sm:$0xff] }
 0x2e5   : > { %v3632_v35 = vadd.f32 %v2703_v46, %v5030_v60  ;;  %v2759_v9 = vadd.f32 %v3630_v39, %v2729_v54  ;;  %v5159_v8 = vadd.f32 %v3638_v63, %v2746_v19  ;;  %v2801_v16 = vadd.f32 %v2800_v29, %v5149_v6 }
 0x2e6   : > { %v5157_v48 = vadd.f32 %v3631_v41, %v2734_v36  ;;  %v2787_v30 = vadd.f32 %v2786_v17, %v2758_v61  ;;  %v5164_v3 = vadd.f32 %v2751_v21, %v5038_v50  ;;  %v5168_v60 = vadd.f32 %v3640_v0, %v2747_v7 }
 0x2e7   : > { %v5166_v33 = vadd.f32 %v3632_v35, %v2735_v59  ;;  %v2802_v25 = vadd.f32 %v2801_v16, %v5155_v2  ;;  %v2808_v57 = vadd.f32 %v2807_v28, %v5159_v8 }
 0x2e8   : > { %v2788_v27 = vadd.f32 %v2787_v30, %v2759_v9  ;;  %v2794_v54 = vadd.f32 %v2793_v1, %v5157_v48  ;;  %v2717_v39 = vpop.f32.mrb[36].mxu1  ;;  %v2814_v36 = vadd.f32 %v2813_v4, %v5164_v3 }
 0x2e9   : > { %v2718_v17 = vadd.f32 %v2717_v39, %v5036_v38  ;;  %v2719_v29 = vpop.f32.mrb[37].mxu1  ;;  %2803 = vadd.xlane.f32.xlu1 %v2802_v25  ;;  %v2809_v28 = vadd.f32 %v2808_v57, %v5168_v60 }
 0x2ea   : > { %2789 = vadd.xlane.f32.xlu0 %v2788_v27  ;;  %v2720_v50 = vadd.f32 %v2719_v29, %v5040_v43  ;;  %v2721_v40 = vpop.f32.mrb[38].mxu1  ;;  %v2795_v1 = vadd.f32 %v2794_v54, %v5166_v33 }
 0x2eb   : > { %v5178_v58 = vadd.f32 %v2752_v32, %v2718_v17  ;;  %v2722_v19 = vpop.f32.mrb[39].mxu1 }
 0x2ec   : > { %v5182_v21 = vadd.f32 %v2753_v45, %v2720_v50 }
 0x2ed   : > { %2810 = vadd.xlane.f32.xlu1 %v2809_v28  ;;  %v2815_v38 = vadd.f32 %v2814_v36, %v5178_v58 }
 0x2ee   : > { %2796 = vadd.xlane.f32.xlu0 %v2795_v1 }
 0x2ef   : > { %v2816_v41 = vadd.f32 %v2815_v38, %v5182_v21 }
 0x2f2   : > { %2817 = vadd.xlane.f32.xlu0 %v2816_v41 }
 0x376   : > { %v2804_v43 = vpop.xlane.xlu1 %2803 }
 0x377   : > { %v2790_v63 = vpop.xlane.xlu0 %2789  ;;  %v2822_v46 = vmul.f32 0.0013020834, %v2804_v43 }
 0x378   : > { %v2820_v59 = vmul.f32 0.0013020834, %v2790_v63 }
 0x379   : > { %v5199_v4 = vsub.f32 %v5066_v20, %v2822_v46  ;;  %v5202_v25 = vsub.f32 %v5069_v31, %v2822_v46  ;;  %v5215_v39 = vsub.f32 %v5088_v18, %v2822_v46  ;;  %v5218_v31 = vsub.f32 %v5117_v47, %v2822_v46 }
 0x37a   : > { %v5187_v51 = vsub.f32 %v5051_v5, %v2820_v59  ;;  %v5190_v7 = vsub.f32 %v5056_v11, %v2820_v59  ;;  %v5193_v35 = vsub.f32 %v5080_v15, %v2820_v59  ;;  %v2811_v0 = vpop.xlane.xlu1 %2810  ;;  %v5196_v30 = vsub.f32 %v5111_v42, %v2820_v59 }
 0x37b   : > { %v2797_v16 = vpop.xlane.xlu0 %2796  ;;  %v5204_v5 = vsub.f32 %v2758_v61, %v2820_v59  ;;  %v2823_v57 = vmul.f32 0.0013020834, %v2811_v0  ;;  %v5210_v54 = vsub.f32 %v2759_v9, %v2820_v59  ;;  %v2867_v17 = vmul.f32 %v5199_v4, %v5199_v4 }
 0x37c   : > { %v2821_v27 = vmul.f32 0.0013020834, %v2797_v16  ;;  %v2855_v11 = vmul.f32 %v5187_v51, %v5187_v51  ;;  %v2856_v15 = vmul.f32 %v5190_v7, %v5190_v7  ;;  %v2857_v42 = vmul.f32 %v5193_v35, %v5193_v35 }
 0x37d   : > { %v2858_v32 = vmul.f32 %v5196_v30, %v5196_v30  ;;  %v2868_v9 = vmul.f32 %v5202_v25, %v5202_v25  ;;  %v2859_v18 = vmul.f32 %v5204_v5, %v5204_v5  ;;  %v5232_v47 = vsub.f32 %v5149_v6, %v2822_v46 }
 0x37e   : > { %v2885_v20 = vadd.f32 %v2856_v15, %v2855_v11  ;;  %v5227_v29 = vsub.f32 %v5059_v13, %v2821_v27  ;;  %v5235_v50 = vsub.f32 %v5155_v2, %v2822_v46  ;;  %v2860_v40 = vmul.f32 %v5210_v54, %v5210_v54 }
 0x37f   : > { %v2818_v61 = vpop.xlane.xlu0 %2817  ;;  %v2869_v36 = vmul.f32 %v5215_v39, %v5215_v39  ;;  %v2899_v19 = vadd.f32 %v2868_v9, %v2867_v17  ;;  %v5242_v13 = vsub.f32 %v5062_v14, %v2821_v27  ;;  %v2870_v38 = vmul.f32 %v5218_v31, %v5218_v31 }
 0x380   : > { %v2886_v45 = vadd.f32 %v2885_v20, %v2857_v42  ;;  %v2824_v28 = vmul.f32 0.0013020834, %v2818_v61  ;;  %v5247_v6 = vsub.f32 %v5083_v44, %v2821_v27  ;;  %v5250_v41 = vsub.f32 %v5114_v12, %v2821_v27 }
 0x381   : > { %v2900_v2 = vadd.f32 %v2899_v19, %v2869_v36  ;;  %v2861_v43 = vmul.f32 %v5227_v29, %v5227_v29  ;;  %v2862_v63 = vmul.f32 %v5242_v13, %v5242_v13  ;;  %v2871_v46 = vmul.f32 %v5232_v47, %v5232_v47 }
 0x382   : > { %v2887_v1 = vadd.f32 %v2886_v45, %v2858_v32  ;;  %v2872_v59 = vmul.f32 %v5235_v50, %v5235_v50  ;;  %v5261_v44 = vsub.f32 %v5157_v48, %v2821_v27  ;;  %v2863_v12 = vmul.f32 %v5247_v6, %v5247_v6 }
 0x383   : > { %v2901_v0 = vadd.f32 %v2900_v2, %v2870_v38  ;;  %v2892_v16 = vadd.f32 %v2862_v63, %v2861_v43  ;;  %v5266_v11 = vsub.f32 %v5072_v34, %v2823_v57  ;;  %v5269_v42 = vsub.f32 %v5166_v33, %v2821_v27 }
 0x384   : > { %v2888_v14 = vadd.f32 %v2887_v1, %v2859_v18  ;;  %v5272_v20 = vsub.f32 %v5075_v24, %v2823_v57  ;;  %v5275_v61 = vsub.f32 %v5096_v37, %v2823_v57  ;;  %v2864_v32 = vmul.f32 %v5250_v41, %v5250_v41 }
 0x385   : > { %v2902_v48 = vadd.f32 %v2901_v0, %v2871_v46  ;;  %v2893_v17 = vadd.f32 %v2892_v16, %v2863_v12  ;;  %v5280_v9 = vsub.f32 %v5120_v49, %v2823_v57  ;;  %v2865_v34 = vmul.f32 %v5261_v44, %v5261_v44 }
 0x386   : > { %v2889_v15 = vadd.f32 %v2888_v14, %v2860_v40  ;;  %v2873_v33 = vmul.f32 %v5266_v11, %v5266_v11  ;;  %v2874_v24 = vmul.f32 %v5272_v20, %v5272_v20  ;;  %v5289_v18 = vsub.f32 %v5159_v8, %v2823_v57 }
 0x387   : > { %v2903_v37 = vadd.f32 %v2902_v48, %v2872_v59  ;;  %v2894_v27 = vadd.f32 %v2893_v17, %v2864_v32  ;;  %v2875_v45 = vmul.f32 %v5275_v61, %v5275_v61  ;;  %v5294_v40 = vsub.f32 %v5104_v26, %v2824_v28 }
 0x388   : > { %2890 = vadd.xlane.f32.xlu1 %v2889_v15  ;;  %v2906_v49 = vadd.f32 %v2874_v24, %v2873_v33  ;;  %v5297_v36 = vsub.f32 %v5107_v53, %v2824_v28  ;;  %v5300_v19 = vsub.f32 %v5143_v10, %v2824_v28  ;;  %v2866_v1 = vmul.f32 %v5269_v42, %v5269_v42 }
 0x389   : > { %v2895_v38 = vadd.f32 %v2894_v27, %v2865_v34  ;;  %v5305_v8 = vsub.f32 %v5168_v60, %v2823_v57  ;;  %v2876_v2 = vmul.f32 %v5280_v9, %v5280_v9  ;;  %v5310_v26 = vsub.f32 %v5164_v3, %v2824_v28 }
 0x38a   : > { %v2907_v43 = vadd.f32 %v2906_v49, %v2875_v45  ;;  %v2879_v53 = vmul.f32 %v5294_v40, %v5294_v40  ;;  %v2880_v10 = vmul.f32 %v5297_v36, %v5297_v36  ;;  %v2877_v14 = vmul.f32 %v5289_v18, %v5289_v18 }
 0x38b   : > { %v2896_v63 = vadd.f32 %v2895_v38, %v2866_v1  ;;  %v5319_v57 = vsub.f32 %v5178_v58, %v2824_v28  ;;  %v2881_v46 = vmul.f32 %v5300_v19, %v5300_v19  ;;  %v2878_v3 = vmul.f32 %v5305_v8, %v5305_v8  ;;  %v2965_v38 = vld [vmem:[#allocation10] sm:$0x3f] }
 0x38c   : > { %2904 = vadd.xlane.f32.xlu1 %v2903_v37  ;;  %v2908_v60 = vadd.f32 %v2907_v43, %v2876_v2  ;;  %v2913_v59 = vadd.f32 %v2880_v10, %v2879_v53  ;;  %v5326_v12 = vsub.f32 %v5182_v21, %v2824_v28  ;;  %v2882_v16 = vmul.f32 %v5310_v26, %v5310_v26  ;;  %v3027_v2 = vld [vmem:[#allocation11] sm:$0x3f] }
 0x38d   : > { %2897 = vadd.xlane.f32.xlu0 %v2896_v63  ;;  %v2883_v58 = vmul.f32 %v5319_v57, %v5319_v57  ;;  %v5335_v53 = vrot.slane %v2965_v38, %v4952_v55  ;;  %v5338_v10 = vrot.slane %v3027_v2, %v4952_v55  ;;  %v5356_v55 = vrot.slane %v3027_v2, %v5001_v56 }
 0x38e   : > { %v2909_v0 = vadd.f32 %v2908_v60, %v2877_v14  ;;  %v2914_v15 = vadd.f32 %v2913_v59, %v2881_v46  ;;  %v2884_v17 = vmul.f32 %v5326_v12, %v5326_v12  ;;  %v5341_v14 = vrot.slane %v2965_v38, %v4959_v62 }
 0x38f   : > { %v5344_v60 = vrot.slane %v3027_v2, %v4959_v62  ;;  %v5347_v46 = vrot.slane %v2965_v38, %v4998_v52  ;;  %v5362_v62 = vrot.slane %v3027_v2, %v5011_v22 }
 0x390   : > { %v2910_v48 = vadd.f32 %v2909_v0, %v2878_v3  ;;  %v2915_v32 = vadd.f32 %v2914_v15, %v2882_v16  ;;  %v5350_v3 = vrot.slane %v3027_v2, %v4998_v52  ;;  %v5353_v0 = vrot.slane %v2965_v38, %v5001_v56 }
 0x391   : > { %v5359_v16 = vrot.slane %v2965_v38, %v5011_v22 }
 0x392   : > { %2911 = vadd.xlane.f32.xlu0 %v2910_v48  ;;  %v2916_v34 = vadd.f32 %v2915_v32, %v2883_v58  ;;  %v5365_v48 = vrot.slane %v2965_v38, %v5014_v23  ;;  %v5368_v58 = vrot.slane %v3027_v2, %v5014_v23 }
 0x394   : > { %v2917_v33 = vadd.f32 %v2916_v34, %v2884_v17 }
 0x396   : > { %2918 = vadd.xlane.f32.xlu1 %v2917_v33 }
 0x415   : > { %v2891_v24 = vpop.xlane.xlu1 %2890 }
 0x416   : > { %v2920_v37 = vmul.f32 0.0013020834, %v2891_v24 }
 0x418   : > { %v2925_v21 = vadd.f32 1e-12, %v2920_v37 }
 0x419   : > { %v2905_v28 = vpop.xlane.xlu1 %2904 }
 0x41a   : > { %4216 = vrsqrt.f32 %v2925_v21  ;;  %v2922_v27 = vmul.f32 0.0013020834, %v2905_v28  ;;  %v2898_v49 = vpop.xlane.xlu0 %2897 }
 0x41b   : > { %v2921_v1 = vmul.f32 0.0013020834, %v2898_v49 }
 0x41c   : > { %v2927_v45 = vadd.f32 1e-12, %v2922_v27 }
 0x41d   : > { %v2926_v43 = vadd.f32 1e-12, %v2921_v1 }
 0x41e   : > { %4218 = vrsqrt.f32 %v2927_v45 }
 0x41f   : > { %4220 = vrsqrt.f32 %v2926_v43  ;;  %v2912_v63 = vpop.xlane.xlu0 %2911 }
 0x420   : > { %v2923_v59 = vmul.f32 0.0013020834, %v2912_v63 }
 0x422   : > { %v2928_v52 = vadd.f32 1e-12, %v2923_v59 }
 0x423   : > { %v2919_v33 = vpop.xlane.xlu1 %2918 }
 0x424   : > { %v4217_v15 = vpop.eup %4216  ;;  %v2924_v37 = vmul.f32 0.0013020834, %v2919_v33  ;;  %4222 = vrsqrt.f32 %v2928_v52 }
 0x425   : > { %v2935_v32 = vmul.f32 %v4217_v15, %v5187_v51  ;;  %v2936_v17 = vmul.f32 %v4217_v15, %v5190_v7  ;;  %v2937_v56 = vmul.f32 %v4217_v15, %v5193_v35  ;;  %v2938_v34 = vmul.f32 %v4217_v15, %v5196_v30 }
 0x426   : > { %v2939_v24 = vmul.f32 %v4217_v15, %v5204_v5  ;;  %v2940_v22 = vmul.f32 %v4217_v15, %v5210_v54  ;;  %v2929_v27 = vadd.f32 1e-12, %v2924_v37 }
 0x427   : > { %v2997_v21 = vmul.f32 %v5335_v53, %v2935_v32  ;;  %v2998_v23 = vmul.f32 %v5341_v14, %v2936_v17  ;;  %v2999_v51 = vmul.f32 %v5347_v46, %v2937_v56  ;;  %v3000_v7 = vmul.f32 %v5353_v0, %v2938_v34 }
 0x428   : > { %v4219_v28 = vpop.eup %4218  ;;  %v3001_v35 = vmul.f32 %v5359_v16, %v2939_v24  ;;  %v3002_v30 = vmul.f32 %v5365_v48, %v2940_v22  ;;  %4224 = vrsqrt.f32 %v2929_v27 }
 0x429   : > { %v3059_v5 = vadd.f32 %v5338_v10, %v2997_v21  ;;  %v3060_v54 = vadd.f32 %v5344_v60, %v2998_v23  ;;  %v3061_v45 = vadd.f32 %v5350_v3, %v2999_v51  ;;  %v3062_v49 = vadd.f32 %v5356_v55, %v3000_v7  ;;  %v4221_v63 = vpop.eup %4220 }
 0x42a   : > { %v3063_v1 = vadd.f32 %v5362_v62, %v3001_v35  ;;  %v3064_v38 = vadd.f32 %v5368_v58, %v3002_v30  ;;  %v2947_v2 = vmul.f32 %v4219_v28, %v5199_v4  ;;  %v2948_v43 = vmul.f32 %v4219_v28, %v5202_v25 }
 0x42b   : > { %3089 = vst [vmem:[%s5391_s27] sm:$0xff] %v3059_v5  ;;  %3090 = vst [vmem:[%s5391_s27 + $0x8] sm:$0xff] %v3060_v54  ;;  %v2949_v59 = vmul.f32 %v4219_v28, %v5215_v39  ;;  %v2950_v15 = vmul.f32 %v4219_v28, %v5218_v31  ;;  %v2951_v4 = vmul.f32 %v4219_v28, %v5232_v47 }
 0x42c   : > { %3091 = vst [vmem:[%s5391_s27 + $0x10] sm:$0xff] %v3061_v45  ;;  %3092 = vst [vmem:[%s5391_s27 + $0x18] sm:$0xff] %v3062_v49  ;;  %v2952_v25 = vmul.f32 %v4219_v28, %v5235_v50  ;;  %v3009_v52 = vmul.f32 %v5335_v53, %v2947_v2  ;;  %v3010_v32 = vmul.f32 %v5341_v14, %v2948_v43 }
 0x42d   : > { %3093 = vst [vmem:[%s5391_s27 + $0x20] sm:$0xff] %v3063_v1  ;;  %3094 = vst [vmem:[%s5391_s27 + $0x28] sm:$0xff] %v3064_v38  ;;  %v2941_v17 = vmul.f32 %v4221_v63, %v5227_v29  ;;  %v2942_v56 = vmul.f32 %v4221_v63, %v5242_v13  ;;  %v3011_v39 = vmul.f32 %v5347_v46, %v2949_v59 }
 0x42e   : > { %v3012_v31 = vmul.f32 %v5353_v0, %v2950_v15  ;;  %v3013_v47 = vmul.f32 %v5359_v16, %v2951_v4  ;;  %v3014_v50 = vmul.f32 %v5365_v48, %v2952_v25  ;;  %v3071_v34 = vadd.f32 %v5338_v10, %v3009_v52  ;;  %v4223_v23 = vpop.eup %4222 }
 0x42f   : > { %v3072_v33 = vadd.f32 %v5344_v60, %v3010_v32  ;;  %v2943_v29 = vmul.f32 %v4221_v63, %v5247_v6  ;;  %v2944_v13 = vmul.f32 %v4221_v63, %v5250_v41  ;;  %v3073_v24 = vadd.f32 %v5350_v3, %v3011_v39 }
 0x430   : > { %v3074_v22 = vadd.f32 %v5356_v55, %v3012_v31  ;;  %v3075_v37 = vadd.f32 %v5362_v62, %v3013_v47  ;;  %v3076_v21 = vadd.f32 %v5368_v58, %v3014_v50  ;;  %3101 = vst [vmem:[%s5391_s27 + $0x60] sm:$0xff] %v3071_v34  ;;  %v2945_v51 = vmul.f32 %v4221_v63, %v5261_v44 }
 0x431   : > { %3102 = vst [vmem:[%s5391_s27 + $0x68] sm:$0xff] %v3072_v33  ;;  %v2946_v7 = vmul.f32 %v4221_v63, %v5269_v42  ;;  %v3003_v6 = vmul.f32 %v5335_v53, %v2941_v17  ;;  %v3004_v28 = vmul.f32 %v5341_v14, %v2942_v56  ;;  %3103 = vst [vmem:[%s5391_s27 + $0x70] sm:$0xff] %v3073_v24 }
 0x432   : > { %3104 = vst [vmem:[%s5391_s27 + $0x78] sm:$0xff] %v3074_v22  ;;  %3105 = vst [vmem:[%s5391_s27 + $0x80] sm:$0xff] %v3075_v37  ;;  %v3005_v41 = vmul.f32 %v5347_v46, %v2943_v29  ;;  %v3006_v35 = vmul.f32 %v5353_v0, %v2944_v13  ;;  %v2953_v44 = vmul.f32 %v4223_v23, %v5266_v11  ;;  %v4225_v56 = vpop.eup %4224 }
 0x433   : > { %3106 = vst [vmem:[%s5391_s27 + $0x88] sm:$0xff] %v3076_v21  ;;  %v3007_v42 = vmul.f32 %v5359_v16, %v2945_v51  ;;  %v3008_v30 = vmul.f32 %v5365_v48, %v2946_v7  ;;  %v3065_v5 = vadd.f32 %v5338_v10, %v3003_v6  ;;  %v3066_v54 = vadd.f32 %v5344_v60, %v3004_v28 }
 0x434   : > { %v3067_v45 = vadd.f32 %v5350_v3, %v3005_v41  ;;  %v3068_v49 = vadd.f32 %v5356_v55, %v3006_v35  ;;  %v2954_v27 = vmul.f32 %v4223_v23, %v5272_v20  ;;  %v2955_v1 = vmul.f32 %v4223_v23, %v5275_v61 }
 0x435   : > { %v3069_v11 = vadd.f32 %v5362_v62, %v3007_v42  ;;  %v3070_v38 = vadd.f32 %v5368_v58, %v3008_v30  ;;  %3095 = vst [vmem:[%s5391_s27 + $0x30] sm:$0xff] %v3065_v5  ;;  %3096 = vst [vmem:[%s5391_s27 + $0x38] sm:$0xff] %v3066_v54  ;;  %v2956_v2 = vmul.f32 %v4223_v23, %v5280_v9 }
 0x436   : > { %v2957_v43 = vmul.f32 %v4223_v23, %v5289_v18  ;;  %3097 = vst [vmem:[%s5391_s27 + $0x40] sm:$0xff] %v3067_v45  ;;  %3098 = vst [vmem:[%s5391_s27 + $0x48] sm:$0xff] %v3068_v49  ;;  %v2958_v63 = vmul.f32 %v4223_v23, %v5305_v8  ;;  %v3015_v20 = vmul.f32 %v5335_v53, %v2953_v44 }
 0x437   : > { %v3016_v61 = vmul.f32 %v5341_v14, %v2954_v27  ;;  %v3017_v59 = vmul.f32 %v5347_v46, %v2955_v1  ;;  %3099 = vst [vmem:[%s5391_s27 + $0x50] sm:$0xff] %v3069_v11  ;;  %3100 = vst [vmem:[%s5391_s27 + $0x58] sm:$0xff] %v3070_v38  ;;  %v3018_v9 = vmul.f32 %v5353_v0, %v2956_v2 }
 0x438   : > { %v3019_v18 = vmul.f32 %v5359_v16, %v2957_v43  ;;  %v3020_v15 = vmul.f32 %v5365_v48, %v2958_v63  ;;  %v3077_v8 = vadd.f32 %v5338_v10, %v3015_v20  ;;  %v2959_v39 = vmul.f32 %v4225_v56, %v5294_v40 }
 0x439   : > { %v3078_v4 = vadd.f32 %v5344_v60, %v3016_v61  ;;  %v3079_v25 = vadd.f32 %v5350_v3, %v3017_v59  ;;  %v3080_v52 = vadd.f32 %v5356_v55, %v3018_v9  ;;  %v2960_v31 = vmul.f32 %v4225_v56, %v5297_v36 }
 0x43a   : > { %v3081_v32 = vadd.f32 %v5362_v62, %v3019_v18  ;;  %v3082_v17 = vadd.f32 %v5368_v58, %v3020_v15  ;;  %3107 = vst [vmem:[%s5391_s27 + $0x90] sm:$0xff] %v3077_v8  ;;  %v2961_v47 = vmul.f32 %v4225_v56, %v5300_v19  ;;  %v2962_v50 = vmul.f32 %v4225_v56, %v5310_v26 }
 0x43b   : > { %3108 = vst [vmem:[%s5391_s27 + $0x98] sm:$0xff] %v3078_v4  ;;  %3109 = vst [vmem:[%s5391_s27 + $0xa0] sm:$0xff] %v3079_v25  ;;  %v2963_v34 = vmul.f32 %v4225_v56, %v5319_v57  ;;  %v2964_v33 = vmul.f32 %v4225_v56, %v5326_v12  ;;  %v3021_v29 = vmul.f32 %v5335_v53, %v2959_v39 }
 0x43c   : > { %3110 = vst [vmem:[%s5391_s27 + $0xa8] sm:$0xff] %v3080_v52  ;;  %3111 = vst [vmem:[%s5391_s27 + $0xb0] sm:$0xff] %v3081_v32  ;;  %v3022_v13 = vmul.f32 %v5341_v14, %v2960_v31  ;;  %v3023_v40 = vmul.f32 %v5347_v46, %v2961_v47  ;;  %v3024_v36 = vmul.f32 %v5353_v0, %v2962_v50 }
 0x43d   : > { %3112 = vst [vmem:[%s5391_s27 + $0xb8] sm:$0xff] %v3082_v17  ;;  %v3025_v19 = vmul.f32 %v5359_v16, %v2963_v34  ;;  %v3026_v26 = vmul.f32 %v5365_v48, %v2964_v33  ;;  %v3083_v57 = vadd.f32 %v5338_v10, %v3021_v29 }
 0x43e   : > { %v3084_v12 = vadd.f32 %v5344_v60, %v3022_v13  ;;  %v3085_v53 = vadd.f32 %v5350_v3, %v3023_v40  ;;  %v3086_v14 = vadd.f32 %v5356_v55, %v3024_v36 }
 0x43f   : > { %v3087_v46 = vadd.f32 %v5362_v62, %v3025_v19  ;;  %v3088_v10 = vadd.f32 %v5368_v58, %v3026_v26  ;;  %3113 = vst [vmem:[%s5391_s27 + $0xc0] sm:$0xff] %v3083_v57 }
 0x440   : > { %3114 = vst [vmem:[%s5391_s27 + $0xc8] sm:$0xff] %v3084_v12  ;;  %3115 = vst [vmem:[%s5391_s27 + $0xd0] sm:$0xff] %v3085_v53 }
 0x441   : > { %3116 = vst [vmem:[%s5391_s27 + $0xd8] sm:$0xff] %v3086_v14  ;;  %3117 = vst [vmem:[%s5391_s27 + $0xe0] sm:$0xff] %v3087_v46 }
 0x442   : > { %3118 = vst [vmem:[%s5391_s27 + $0xe8] sm:$0xff] %v3088_v10 }
 0x443   : > { %4411 = shalt.err (!%p4408_p10)
}
 0x444   : > { %s4412_s9 = scalar_lea.hbm %s5490_s30, 3840  ;;  %s4416_s18 = scalar_lea.hbm %s5550_s6, 7680 }
 0x445   : > { %p4413_p11 = scmp.ne.s32.totalorder %s5490_s30, %s4412_s9  ;;  %p4417_p2 = scmp.lt.u32.totalorder %s5490_s30, %s5550_s6 }
 0x446   : > { %p4418_p1 = scmp.lt.u32.totalorder %s4416_s18, %s4412_s9  ;;  %p4420_p0 = scmp.lt.u32.totalorder %s4412_s9, %s5490_s30 }
 0x447   : > { %p4414_p7 = pnand %p4413_p11, %p4690_p5 }
 0x448   : > { %p4419_p13 = por %p4418_p1, %p4417_p2 }
 0x449   : > { %p4415_p12 = pneg %p4414_p7 }
 0x44a   : > { %p4421_p6 = por %p4420_p0, %p4419_p13 }
 0x44c   : > { %p4422_p4 = pnand %p4421_p6, %p4415_p12 }
 0x44e   : > { %4425 = shalt.err (!%p4422_p4)
}
 0x44f   : > { %s4493_s29 = smov 768   ;;  %s4494_s27 = smov 48  }
 0x450   : > { %3703 = dma.vmem_to_hbm [thread:$0]  (%p4690_p5), %s5492_s10, 3840, %s5490_s30, %s3120_s13, %s4493_s29, %s4493_s29, %s4494_s27  }
 0x451 PF: > { %s3149_s7 = sand.u32 1, %s4468_s21   ;;  %p5578_p8 = scmp.ne.s32.totalorder %s5559_s28, 0 }
 0x452   : > { %p5579_p3 = scmp.ge.s32.totalorder %s4480_s24, 2  ;;  %s3150_s25 = scalar_lea.sflag [#allocation4], %s3149_s7 }
 0x454   : > { %p3726_p9 = pnand %p5579_p3, %p5578_p8 }
 0x456   : > { %4463 = dma.done.wait (!%p3726_p9), %s3150_s25, 3840  }
 0x457   : > { %4465 = vsyncadd (!%p3726_p9), %s3150_s25, 4294963456  ;;  %p24_p10 = scmp.ge.s32.totalorder %s4676_s16, 4   ;;  %s5580_s21 = smov %s4472_s22 }
 0x458   : > { %s5581_s22 = smov %s4476_s23  ;;  %s5582_s23 = smov %s4686_s19 }
 0x459   : > { %s5583_s24 = smov %s4676_s16  ;;  %26 = sbr.rel (!%p24_p10) target bundleno = 13 (0xd), region = 118 }
 0x460   :  { %3155 = vsyncpa [#allocation3], 1 }
 0x461   :  { %3157 = vsyncpa [#allocation3 + $0x1], 1 }
 0x462   :  { %3158 = vsyncpa [#allocation6], 1 }
 0x463   :  { %3160 = vsyncpa [#allocation6 + $0x1], 1 }
 0x464   :  { %3161 = vsyncpa [#allocation9], 1 }
 0x465   :  { %3162 = vsyncpa [#allocation12], 1 }
 0x466   :  { %3163 = vsyncpa [#allocation4], 1 }
 0x467   :  { %3165 = vsyncpa [#allocation4 + $0x1], 1 }

</bundles_post_ra>
